<compile_context>
chip_gen: v7x
topology: tpu7x:2x2x1
jax: 0.10.0
libtpu: 0.0.40
codegen_flags: <defaults>
</compile_context>

<pallas_src>
import jax
import jax.numpy as jnp
from jax import lax
from jax.experimental import pallas as pl
from jax.experimental.pallas import tpu as pltpu

# ----------------------------- configuration --------------------------------
B = 8                  # batch
T = 8                  # sequence length
RNN_IN = 1             # rnn_input_size
H = 32                 # rnn_hidden_size
N_LAYERS = 2           # rnn_num_layers
RNN_OUT = 16           # rnn_output_size
EMB_SIZES = [(10, 4), (8, 3)]
N_EMB = sum(d for _, d in EMB_SIZES)      # 7
N_CONT = 4
N_STATIC = N_EMB + N_CONT                 # 11  ([emb | cont] feature width)
HIDDEN = [64, 32]
OUT = 1
BN_EPS = 1e-5
LANE = 128                                # = 4*H; fused-gate / padded lane width
W0R_ROW = 16                              # sublane offset of folded-rnn block in w0_slab


# ------------------------------ fused kernel ---------------------------------
def hybrid_kernel(x_ref, hc_ref, xs_ref, vec_ref, w_ref, w0_ref, w1_ref,
                  out_ref, inp_ref):
    # ---- fused LSTM parameters (loaded once, resident for the recurrence) ----
    whh0 = w_ref[0 * H:1 * H, :]            # (H, 4H)   layer-0 hidden weights
    w1cat = w_ref[1 * H:3 * H, :]           # (2H, 4H)  [wih1 ; whh1] stacked
    wih0_row = vec_ref[0:1, :]              # (1, 4H)   layer-0 input weights (K=1)
    b0f = vec_ref[1:2, :]                   # (1, 4H)   b_ih+b_hh layer 0 (g cols x2)
    b1f = vec_ref[2:3, :]                   # (1, 4H)   b_ih+b_hh layer 1 (g cols x2)

    # ---- prologue: hoist the layer-0 input term off the serial critical path ----
    x_tb = x_ref[...]                                        # (T, B)
    inp_ref[...] = (x_tb[:, :, None] * wih0_row[None, :, :]
                    + b0f[None, :, :])                       # (T, B, 4H) in VMEM

    def cell(pre, c_prev):
        # one full-width sigmoid; g-gate columns were pre-scaled by 2, so
        # tanh(pre_g) = 2*sigmoid(2*pre_g) - 1 falls out of the same EUP pass.
        s = jax.nn.sigmoid(pre)             # (B, 4H)
        i_g = s[:, 0 * H:1 * H]
        f_g = s[:, 1 * H:2 * H]
        g_g = 2.0 * s[:, 2 * H:3 * H] - 1.0
        o_g = s[:, 3 * H:4 * H]
        c_new = f_g * c_prev + i_g * g_g
        h_new = o_g * jnp.tanh(c_new)
        return h_new, c_new

    def step(t, carry):
        h0p, c0p, h1p, c1p = carry
        # layer 0: input term was precomputed -> just one MXU dot + gate math
        pre0 = inp_ref[t] + jnp.dot(h0p, whh0, preferred_element_type=jnp.float32)
        h0n, c0n = cell(pre0, c0p)
        # layer 1: single fused (B,2H)@(2H,4H) dot instead of two dots + add
        h01 = jnp.concatenate([h0n, h1p], axis=1)            # (B, 2H)
        pre1 = jnp.dot(h01, w1cat, preferred_element_type=jnp.float32) + b1f
        h1n, c1n = cell(pre1, c1p)
        return h0n, c0n, h1n, c1n

    # hc_ref lanes: [h_l0 | h_l1 | c_l0 | c_l1]
    carry0 = (hc_ref[:, 0 * H:1 * H], hc_ref[:, 2 * H:3 * H],
              hc_ref[:, 1 * H:2 * H], hc_ref[:, 3 * H:4 * H])
    _, _, h1_last, _ = lax.fori_loop(0, T, step, carry0, unroll=True)

    # ---- MLP epilogue: fc0 (bn_cont + fc_rnn folded), ReLU,
    #                    fc1 (BN64 folded), ReLU, fc2 (BN32 folded) ----
    w0s = w0_ref[0:N_STATIC, :]             # (11, 64)  [emb | bn-folded cont] rows
    w0r = w0_ref[W0R_ROW:W0R_ROW + H, :]    # (32, 64)  fc_rnn folded into fc0
    w2 = w_ref[3 * H:4 * H, :]              # (32, 128) final Linear, 128-lane padded
    b0 = vec_ref[3:4, 0:HIDDEN[0]]
    b1 = vec_ref[4:5, 0:HIDDEN[1]]
    b2 = vec_ref[5:6, :]

    h = (jnp.dot(xs_ref[...], w0s, preferred_element_type=jnp.float32)
         + jnp.dot(h1_last, w0r, preferred_element_type=jnp.float32)
         + b0)
    h = jnp.maximum(h, 0.0)                                   # ReLU
    h = jnp.dot(h, w1_ref[...], preferred_element_type=jnp.float32) + b1
    h = jnp.maximum(h, 0.0)                                   # ReLU
    # lane-padded final Linear(32 -> 1): result lives in lane 0, rest is zero.
    out_ref[...] = jnp.dot(h, w2, preferred_element_type=jnp.float32) + b2


def run_hybrid(x_tb, hc, x_static, kp):
    vmem = lambda: pl.BlockSpec(memory_space=pltpu.MemorySpace.VMEM)
    return pl.pallas_call(
        hybrid_kernel,
        out_shape=jax.ShapeDtypeStruct((B, LANE), jnp.float32),
        in_specs=[vmem() for _ in range(7)],
        out_specs=vmem(),
        scratch_shapes=[pltpu.VMEM((T, B, LANE), jnp.float32)],
    )(x_tb, hc, x_static, kp["vec"], kp["w_slab"], kp["w0_slab"], kp["w1"])


# ------------------------------ forward glue --------------------------------
def lstm_hybrid_forward(params, kparams, x_cat, x_cont, x_seq, hidden):
    h0, c0 = hidden
    # embedding lookups + concat (gather stays in JAX glue; whole fn is jitted)
    x_emb = jnp.concatenate(
        [params["emb"][i][x_cat[:, i]] for i in range(len(EMB_SIZES))], axis=1)
    x_static = jnp.concatenate([x_emb, x_cont], axis=1)       # (B, 11), raw
    x_tb = jnp.transpose(x_seq[:, :, 0])                      # (T, B)
    # lane-dense initial state slab [h_l0 | h_l1 | c_l0 | c_l1] -> (B, 128)
    hc = jnp.concatenate([h0[0], h0[1], c0[0], c0[1]], axis=1)
    out_full = run_hybrid(x_tb, hc, x_static, kparams)
    return out_full[:, :OUT]


# ------------------------ kernel-parameter packing ---------------------------
def prepare_kernel_params(p):
    """Fold canonical params into the fused / lane-padded slabs the kernel uses."""
    f32 = jnp.float32
    gate_scale = jnp.array([1.0, 1.0, 2.0, 1.0], f32).reshape(4, 1, 1)  # x2 on g

    def fuse(w4):   # (4, in, H) -> (in, 4H), gate order (i, f, g, o)
        w4 = w4 * gate_scale
        return jnp.concatenate([w4[k] for k in range(4)], axis=1)

    wih0_row = fuse(p["wih0"])              # (1, 128)
    whh0_f = fuse(p["whh0"])                # (32, 128)
    b0_f = fuse(p["b_l0"])                  # (1, 128)
    wih1_f = fuse(p["wih1"])                # (32, 128)
    whh1_f = fuse(p["whh1"])                # (32, 128)
    b1_f = fuse(p["b_l1"])                  # (1, 128)

    # fc0: fold eval-mode bn_cont into its cont rows; fold fc_rnn into an (H,64) block
    w0s = jnp.concatenate(
        [p["w0e_t"],
         p["bnc_scale"].reshape(N_CONT, 1) * p["w0c_t"]], axis=0)        # (11, 64)
    w0r_eff = p["w_fcrnn_t"] @ p["w0r_t"]                                # (32, 64)
    b0_eff = (p["b0"] + p["bnc_shift"] @ p["w0c_t"]
              + p["b_fcrnn"] @ p["w0r_t"])                               # (1, 64)

    # fold BN(64) into fc1 and BN(32) into fc2 (eval mode, exact)
    w1_eff = p["bn1_scale"].reshape(HIDDEN[0], 1) * p["w1_t"]            # (64, 32)
    b1_eff = p["b1"] + p["bn1_shift"] @ p["w1_t"]                        # (1, 32)
    w2_eff = p["bn2_scale"].reshape(HIDDEN[1], 1) * p["w2_t"]            # (32, 1)
    b2_eff = p["b2"] + p["bn2_shift"] @ p["w2_t"]                        # (1, 1)

    # final Linear(32 -> 1) padded to 128 output lanes (only lane 0 is real)
    w2_pad = jnp.zeros((HIDDEN[1], LANE), f32).at[:, :OUT].set(w2_eff)
    b2_pad = jnp.zeros((1, LANE), f32).at[:, :OUT].set(b2_eff)

    def pad_row(v):
        return jnp.zeros((1, LANE), f32).at[:, :v.shape[1]].set(v)

    vec_rows = [wih0_row, b0_f, b1_f, pad_row(b0_eff), pad_row(b1_eff), b2_pad]
    vec_slab = jnp.concatenate(
        vec_rows + [jnp.zeros((8 - len(vec_rows), LANE), f32)], axis=0)   # (8, 128)

    # recurrence weights + final fc, one (128, 128) slab
    w_slab = jnp.concatenate([whh0_f, wih1_f, whh1_f, w2_pad], axis=0)    # (128, 128)

    # fc0 weights: rows 0..10 static part, rows 16..47 the folded fc_rnn part
    w0_slab = jnp.zeros((W0R_ROW + H, HIDDEN[0]), f32)                    # (48, 64)
    w0_slab = w0_slab.at[:N_STATIC, :].set(w0s)
    w0_slab = w0_slab.at[W0R_ROW:W0R_ROW + H, :].set(w0r_eff)

    return {"vec": vec_slab, "w_slab": w_slab, "w0_slab": w0_slab, "w1": w1_eff}


# ---------------------------- pure-JAX reference ----------------------------
def reference_forward(params, x_cat, x_cont, x_seq, hidden):
    h0, c0 = hidden
    x_emb = jnp.concatenate(
        [params["emb"][i][x_cat[:, i]] for i in range(len(EMB_SIZES))], axis=1)

    def cell(x, h, c, wih, whh, b):
        g = [x @ wih[k] + h @ whh[k] + b[k] for k in range(4)]
        i_g = jax.nn.sigmoid(g[0]); f_g = jax.nn.sigmoid(g[1])
        g_g = jnp.tanh(g[2]);       o_g = jax.nn.sigmoid(g[3])
        c2 = f_g * c + i_g * g_g
        return o_g * jnp.tanh(c2), c2

    h = [h0[0], h0[1]]; c = [c0[0], c0[1]]
    for t in range(x_seq.shape[1]):
        xt = x_seq[:, t, :]
        h[0], c[0] = cell(xt, h[0], c[0], params["wih0"], params["whh0"], params["b_l0"])
        h[1], c[1] = cell(h[0], h[1], c[1], params["wih1"], params["whh1"], params["b_l1"])

    rnn_out = h[1] @ params["w_fcrnn_t"] + params["b_fcrnn"]
    xc = x_cont * params["bnc_scale"] + params["bnc_shift"]
    hh = (x_emb @ params["w0e_t"] + xc @ params["w0c_t"]
          + rnn_out @ params["w0r_t"] + params["b0"])
    hh = jnp.maximum(hh, 0.0)
    hh = hh * params["bn1_scale"] + params["bn1_shift"]
    hh = jnp.maximum(hh @ params["w1_t"] + params["b1"], 0.0)
    hh = hh * params["bn2_scale"] + params["bn2_shift"]
    return hh @ params["w2_t"] + params["b2"]


# ------------------------------- param init ---------------------------------
def init_params(key):
    keys = iter(jax.random.split(key, 40))
    nxt = lambda: next(keys)
    f32 = jnp.float32

    def kaiming(k, shape_out_in):
        fan_in = shape_out_in[1]
        std = (2.0 / fan_in) ** 0.5
        return jax.random.normal(k, shape_out_in, f32) * std

    p = {}
    # embeddings: N(0, 0.01) like PyTorch init (fmod omitted)
    p["emb"] = [jax.random.normal(nxt(), (nc, nd), f32) * 0.01
                for nc, nd in EMB_SIZES]
    # LSTM layer 0 / 1, gate order (i, f, g, o), weights stored as (4, in, H)
    p["wih0"] = jax.random.normal(nxt(), (4, RNN_IN, H), f32) * 0.1
    p["whh0"] = jax.random.normal(nxt(), (4, H, H), f32) * 0.1
    p["b_l0"] = jax.random.normal(nxt(), (4, 1, H), f32) * 0.1   # b_ih + b_hh
    p["wih1"] = jax.random.normal(nxt(), (4, H, H), f32) * 0.1
    p["whh1"] = jax.random.normal(nxt(), (4, H, H), f32) * 0.1
    p["b_l1"] = jax.random.normal(nxt(), (4, 1, H), f32) * 0.1
    # fc_rnn: Linear(H -> RNN_OUT), stored transposed (in, out)
    p["w_fcrnn_t"] = kaiming(nxt(), (RNN_OUT, H)).T
    p["b_fcrnn"] = jnp.zeros((1, RNN_OUT), f32)
    # bn_cont (eval, default running stats): scale = 1/sqrt(var+eps), shift = 0
    p["bnc_scale"] = jnp.full((1, N_CONT), 1.0 / (1.0 + BN_EPS) ** 0.5, f32)
    p["bnc_shift"] = jnp.zeros((1, N_CONT), f32)
    # fc_layers[0]: Linear(N_EMB + N_CONT + RNN_OUT -> 64), split by feature group
    w0 = kaiming(nxt(), (HIDDEN[0], N_EMB + N_CONT + RNN_OUT))
    p["w0e_t"] = w0[:, :N_EMB].T
    p["w0c_t"] = w0[:, N_EMB:N_EMB + N_CONT].T
    p["w0r_t"] = w0[:, N_EMB + N_CONT:].T
    p["b0"] = jnp.zeros((1, HIDDEN[0]), f32)
    # BN(64), BN(32) in eval mode with default stats
    p["bn1_scale"] = jnp.full((1, HIDDEN[0]), 1.0 / (1.0 + BN_EPS) ** 0.5, f32)
    p["bn1_shift"] = jnp.zeros((1, HIDDEN[0]), f32)
    p["bn2_scale"] = jnp.full((1, HIDDEN[1]), 1.0 / (1.0 + BN_EPS) ** 0.5, f32)
    p["bn2_shift"] = jnp.zeros((1, HIDDEN[1]), f32)
    # fc_layers Linear(64 -> 32), Linear(32 -> 1)
    p["w1_t"] = kaiming(nxt(), (HIDDEN[1], HIDDEN[0])).T
    p["b1"] = jnp.zeros((1, HIDDEN[1]), f32)
    p["w2_t"] = kaiming(nxt(), (OUT, HIDDEN[1])).T
    p["b2"] = jnp.zeros((1, OUT), f32)
    return p


# ---------------------------------- main -------------------------------------
if __name__ == "__main__":
    root = jax.random.PRNGKey(0)
    k_par, k_c0, k_c1, k_cont, k_seq, k_h, k_c = jax.random.split(root, 7)

    params = init_params(k_par)
    kparams = prepare_kernel_params(params)

    x_cat = jnp.stack(
        [jax.random.randint(k_c0, (B,), 0, EMB_SIZES[0][0]),
         jax.random.randint(k_c1, (B,), 0, EMB_SIZES[1][0])], axis=1)      # (B, 2)
    x_cont = jax.random.normal(k_cont, (B, N_CONT), jnp.float32)           # (B, 4)
    x_seq = jax.random.normal(k_seq, (B, T, RNN_IN), jnp.float32)          # (B, T, 1)
    h0 = jax.random.normal(k_h, (N_LAYERS, B, H), jnp.float32)
    c0 = jax.random.normal(k_c, (N_LAYERS, B, H), jnp.float32)

    # jit the whole forward so the tiny wrapper ops dispatch as one program
    fwd = jax.jit(lstm_hybrid_forward)
    out = fwd(params, kparams, x_cat, x_cont, x_seq, (h0, c0))
    out = jax.block_until_ready(out)

    ref = reference_forward(params, x_cat, x_cont, x_seq, (h0, c0))
    assert out.shape == (B, OUT)
    assert jnp.allclose(out, ref, rtol=1e-3, atol=1e-3), (out, ref)

    print("KERNEL_OK")
</pallas_src>

<mosaic_0001>
module attributes {stable_mosaic.version = 11 : i64} {
  func.func @hybrid_kernel(%arg0: memref<8x8xf32, #tpu.memory_space<vmem>>, %arg1: memref<8x128xf32, #tpu.memory_space<vmem>>, %arg2: memref<8x11xf32, #tpu.memory_space<vmem>>, %arg3: memref<8x128xf32, #tpu.memory_space<vmem>>, %arg4: memref<128x128xf32, #tpu.memory_space<vmem>>, %arg5: memref<48x64xf32, #tpu.memory_space<vmem>>, %arg6: memref<64x32xf32, #tpu.memory_space<vmem>>, %arg7: memref<8x128xf32, #tpu.memory_space<vmem>>, %arg8: memref<8x8x128xf32, #tpu.memory_space<vmem>>) attributes {dimension_semantics = [], scalar_prefetch = 0 : i64, scratch_operands = 1 : i64, tpu.core_type = #tpu.core_type<tc>} {
    %c0 = arith.constant 0 : index
    %c0_0 = arith.constant 0 : index
    %0 = vector.load %arg4[%c0, %c0_0] : memref<128x128xf32, #tpu.memory_space<vmem>>, vector<32x128xf32>
    %c32 = arith.constant 32 : index
    %c0_1 = arith.constant 0 : index
    %1 = vector.load %arg4[%c32, %c0_1] : memref<128x128xf32, #tpu.memory_space<vmem>>, vector<64x128xf32>
    %c0_2 = arith.constant 0 : index
    %c0_3 = arith.constant 0 : index
    %2 = vector.load %arg3[%c0_2, %c0_3] : memref<8x128xf32, #tpu.memory_space<vmem>>, vector<1x128xf32>
    %c1 = arith.constant 1 : index
    %c0_4 = arith.constant 0 : index
    %3 = vector.load %arg3[%c1, %c0_4] : memref<8x128xf32, #tpu.memory_space<vmem>>, vector<1x128xf32>
    %c2 = arith.constant 2 : index
    %c0_5 = arith.constant 0 : index
    %4 = vector.load %arg3[%c2, %c0_5] : memref<8x128xf32, #tpu.memory_space<vmem>>, vector<1x128xf32>
    %c0_6 = arith.constant 0 : index
    %c0_7 = arith.constant 0 : index
    %5 = vector.load %arg0[%c0_6, %c0_7] : memref<8x8xf32, #tpu.memory_space<vmem>>, vector<8x8xf32>
    %6 = vector.shape_cast %5 : vector<8x8xf32> to vector<8x8x1xf32>
    %7 = vector.shape_cast %2 : vector<1x128xf32> to vector<1x1x128xf32>
    %8 = vector.broadcast %6 : vector<8x8x1xf32> to vector<8x8x128xf32>
    %9 = vector.broadcast %7 : vector<1x1x128xf32> to vector<8x8x128xf32>
    %10 = arith.mulf %8, %9 : vector<8x8x128xf32>
    %11 = vector.shape_cast %3 : vector<1x128xf32> to vector<1x1x128xf32>
    %12 = vector.broadcast %11 : vector<1x1x128xf32> to vector<8x8x128xf32>
    %13 = arith.addf %10, %12 : vector<8x8x128xf32>
    %c0_8 = arith.constant 0 : index
    %c0_9 = arith.constant 0 : index
    %c0_10 = arith.constant 0 : index
    %14 = vector.load %arg8[%c0_8, %c0_9, %c0_10] : memref<8x8x128xf32, #tpu.memory_space<vmem>>, vector<8x8x128xf32>
    tpu.vector_store %arg8[%c0_8, %c0_9, %c0_10], %13 {strides = array<i32>} : memref<8x8x128xf32, #tpu.memory_space<vmem>>, vector<8x8x128xf32>,
    %c0_11 = arith.constant 0 : index
    %c0_12 = arith.constant 0 : index
    %15 = vector.load %arg1[%c0_11, %c0_12] : memref<8x128xf32, #tpu.memory_space<vmem>>, vector<8x32xf32>
    %c0_13 = arith.constant 0 : index
    %c64 = arith.constant 64 : index
    %16 = vector.load %arg1[%c0_13, %c64] : memref<8x128xf32, #tpu.memory_space<vmem>>, vector<8x32xf32>
    %c0_14 = arith.constant 0 : index
    %c32_15 = arith.constant 32 : index
    %17 = vector.load %arg1[%c0_14, %c32_15] : memref<8x128xf32, #tpu.memory_space<vmem>>, vector<8x32xf32>
    %c0_16 = arith.constant 0 : index
    %c96 = arith.constant 96 : index
    %18 = vector.load %arg1[%c0_16, %c96] : memref<8x128xf32, #tpu.memory_space<vmem>>, vector<8x32xf32>
    %c0_i32 = arith.constant 0 : i32
    %19 = arith.index_cast %c0_i32 : i32 to index
    %c0_17 = arith.constant 0 : index
    %c0_18 = arith.constant 0 : index
    %20 = vector.load %arg8[%19, %c0_17, %c0_18] : memref<8x8x128xf32, #tpu.memory_space<vmem>>, vector<1x8x128xf32>
    %21 = vector.shape_cast %20 : vector<1x8x128xf32> to vector<8x128xf32>
    %cst = arith.constant dense<0.000000e+00> : vector<8x128xf32>
    %22 = tpu.matmul %15, %0, %cst {dimension_numbers = #tpu.dot_dimension_numbers<[1], [0], [0], [1], [0, 0, 1, 1], [], []>} : vector<8x32xf32>, vector<32x128xf32>, vector<8x128xf32> -> vector<8x128xf32>
    %23 = arith.addf %21, %22 : vector<8x128xf32>
    %24 = arith.negf %23 : vector<8x128xf32>
    %25 = math.exp %24 : vector<8x128xf32>
    %cst_19 = arith.constant 1.000000e+00 : f32
    %26 = vector.broadcast %cst_19 : f32 to vector<8x128xf32>
    %27 = arith.addf %26, %25 : vector<8x128xf32>
    %28 = arith.divf %26, %27 : vector<8x128xf32>
    %29 = vector.extract_strided_slice %28 {offsets = [0, 0], sizes = [8, 32], strides = [1, 1]} : vector<8x128xf32> to vector<8x32xf32>
    %30 = vector.extract_strided_slice %28 {offsets = [0, 32], sizes = [8, 32], strides = [1, 1]} : vector<8x128xf32> to vector<8x32xf32>
    %31 = vector.extract_strided_slice %28 {offsets = [0, 64], sizes = [8, 32], strides = [1, 1]} : vector<8x128xf32> to vector<8x32xf32>
    %cst_20 = arith.constant 2.000000e+00 : f32
    %32 = vector.broadcast %cst_20 : f32 to vector<8x32xf32>
    %33 = arith.mulf %32, %31 : vector<8x32xf32>
    %cst_21 = arith.constant 1.000000e+00 : f32
    %34 = vector.broadcast %cst_21 : f32 to vector<8x32xf32>
    %35 = arith.subf %33, %34 : vector<8x32xf32>
    %36 = vector.extract_strided_slice %28 {offsets = [0, 96], sizes = [8, 32], strides = [1, 1]} : vector<8x128xf32> to vector<8x32xf32>
    %37 = arith.mulf %30, %16 : vector<8x32xf32>
    %38 = arith.mulf %29, %35 : vector<8x32xf32>
    %39 = arith.addf %37, %38 : vector<8x32xf32>
    %40 = math.tanh %39 : vector<8x32xf32>
    %41 = arith.mulf %36, %40 : vector<8x32xf32>
    %42 = tpu.concatenate %41, %17 in 1 : vector<8x32xf32>, vector<8x32xf32> -> vector<8x64xf32>
    %cst_22 = arith.constant dense<0.000000e+00> : vector<8x128xf32>
    %43 = tpu.matmul %42, %1, %cst_22 {dimension_numbers = #tpu.dot_dimension_numbers<[1], [0], [0], [1], [0, 0, 1, 1], [], []>} : vector<8x64xf32>, vector<64x128xf32>, vector<8x128xf32> -> vector<8x128xf32>
    %44 = vector.broadcast %4 : vector<1x128xf32> to vector<8x128xf32>
    %45 = arith.addf %43, %44 : vector<8x128xf32>
    %46 = arith.negf %45 : vector<8x128xf32>
    %47 = math.exp %46 : vector<8x128xf32>
    %cst_23 = arith.constant 1.000000e+00 : f32
    %48 = vector.broadcast %cst_23 : f32 to vector<8x128xf32>
    %49 = arith.addf %48, %47 : vector<8x128xf32>
    %50 = arith.divf %48, %49 : vector<8x128xf32>
    %51 = vector.extract_strided_slice %50 {offsets = [0, 0], sizes = [8, 32], strides = [1, 1]} : vector<8x128xf32> to vector<8x32xf32>
    %52 = vector.extract_strided_slice %50 {offsets = [0, 32], sizes = [8, 32], strides = [1, 1]} : vector<8x128xf32> to vector<8x32xf32>
    %53 = vector.extract_strided_slice %50 {offsets = [0, 64], sizes = [8, 32], strides = [1, 1]} : vector<8x128xf32> to vector<8x32xf32>
    %cst_24 = arith.constant 2.000000e+00 : f32
    %54 = vector.broadcast %cst_24 : f32 to vector<8x32xf32>
    %55 = arith.mulf %54, %53 : vector<8x32xf32>
    %cst_25 = arith.constant 1.000000e+00 : f32
    %56 = vector.broadcast %cst_25 : f32 to vector<8x32xf32>
    %57 = arith.subf %55, %56 : vector<8x32xf32>
    %58 = vector.extract_strided_slice %50 {offsets = [0, 96], sizes = [8, 32], strides = [1, 1]} : vector<8x128xf32> to vector<8x32xf32>
    %59 = arith.mulf %52, %18 : vector<8x32xf32>
    %60 = arith.mulf %51, %57 : vector<8x32xf32>
    %61 = arith.addf %59, %60 : vector<8x32xf32>
    %62 = math.tanh %61 : vector<8x32xf32>
    %63 = arith.mulf %58, %62 : vector<8x32xf32>
    %c1_i32 = arith.constant 1 : i32
    %64 = arith.index_cast %c1_i32 : i32 to index
    %c0_26 = arith.constant 0 : index
    %c0_27 = arith.constant 0 : index
    %65 = vector.load %arg8[%64, %c0_26, %c0_27] : memref<8x8x128xf32, #tpu.memory_space<vmem>>, vector<1x8x128xf32>
    %66 = vector.shape_cast %65 : vector<1x8x128xf32> to vector<8x128xf32>
    %cst_28 = arith.constant dense<0.000000e+00> : vector<8x128xf32>
    %67 = tpu.matmul %41, %0, %cst_28 {dimension_numbers = #tpu.dot_dimension_numbers<[1], [0], [0], [1], [0, 0, 1, 1], [], []>} : vector<8x32xf32>, vector<32x128xf32>, vector<8x128xf32> -> vector<8x128xf32>
    %68 = arith.addf %66, %67 : vector<8x128xf32>
    %69 = arith.negf %68 : vector<8x128xf32>
    %70 = math.exp %69 : vector<8x128xf32>
    %cst_29 = arith.constant 1.000000e+00 : f32
    %71 = vector.broadcast %cst_29 : f32 to vector<8x128xf32>
    %72 = arith.addf %71, %70 : vector<8x128xf32>
    %73 = arith.divf %71, %72 : vector<8x128xf32>
    %74 = vector.extract_strided_slice %73 {offsets = [0, 0], sizes = [8, 32], strides = [1, 1]} : vector<8x128xf32> to vector<8x32xf32>
    %75 = vector.extract_strided_slice %73 {offsets = [0, 32], sizes = [8, 32], strides = [1, 1]} : vector<8x128xf32> to vector<8x32xf32>
    %76 = vector.extract_strided_slice %73 {offsets = [0, 64], sizes = [8, 32], strides = [1, 1]} : vector<8x128xf32> to vector<8x32xf32>
    %cst_30 = arith.constant 2.000000e+00 : f32
    %77 = vector.broadcast %cst_30 : f32 to vector<8x32xf32>
    %78 = arith.mulf %77, %76 : vector<8x32xf32>
    %cst_31 = arith.constant 1.000000e+00 : f32
    %79 = vector.broadcast %cst_31 : f32 to vector<8x32xf32>
    %80 = arith.subf %78, %79 : vector<8x32xf32>
    %81 = vector.extract_strided_slice %73 {offsets = [0, 96], sizes = [8, 32], strides = [1, 1]} : vector<8x128xf32> to vector<8x32xf32>
    %82 = arith.mulf %75, %39 : vector<8x32xf32>
    %83 = arith.mulf %74, %80 : vector<8x32xf32>
    %84 = arith.addf %82, %83 : vector<8x32xf32>
    %85 = math.tanh %84 : vector<8x32xf32>
    %86 = arith.mulf %81, %85 : vector<8x32xf32>
    %87 = tpu.concatenate %86, %63 in 1 : vector<8x32xf32>, vector<8x32xf32> -> vector<8x64xf32>
    %cst_32 = arith.constant dense<0.000000e+00> : vector<8x128xf32>
    %88 = tpu.matmul %87, %1, %cst_32 {dimension_numbers = #tpu.dot_dimension_numbers<[1], [0], [0], [1], [0, 0, 1, 1], [], []>} : vector<8x64xf32>, vector<64x128xf32>, vector<8x128xf32> -> vector<8x128xf32>
    %89 = vector.broadcast %4 : vector<1x128xf32> to vector<8x128xf32>
    %90 = arith.addf %88, %89 : vector<8x128xf32>
    %91 = arith.negf %90 : vector<8x128xf32>
    %92 = math.exp %91 : vector<8x128xf32>
    %cst_33 = arith.constant 1.000000e+00 : f32
    %93 = vector.broadcast %cst_33 : f32 to vector<8x128xf32>
    %94 = arith.addf %93, %92 : vector<8x128xf32>
    %95 = arith.divf %93, %94 : vector<8x128xf32>
    %96 = vector.extract_strided_slice %95 {offsets = [0, 0], sizes = [8, 32], strides = [1, 1]} : vector<8x128xf32> to vector<8x32xf32>
    %97 = vector.extract_strided_slice %95 {offsets = [0, 32], sizes = [8, 32], strides = [1, 1]} : vector<8x128xf32> to vector<8x32xf32>
    %98 = vector.extract_strided_slice %95 {offsets = [0, 64], sizes = [8, 32], strides = [1, 1]} : vector<8x128xf32> to vector<8x32xf32>
    %cst_34 = arith.constant 2.000000e+00 : f32
    %99 = vector.broadcast %cst_34 : f32 to vector<8x32xf32>
    %100 = arith.mulf %99, %98 : vector<8x32xf32>
    %cst_35 = arith.constant 1.000000e+00 : f32
    %101 = vector.broadcast %cst_35 : f32 to vector<8x32xf32>
    %102 = arith.subf %100, %101 : vector<8x32xf32>
    %103 = vector.extract_strided_slice %95 {offsets = [0, 96], sizes = [8, 32], strides = [1, 1]} : vector<8x128xf32> to vector<8x32xf32>
    %104 = arith.mulf %97, %61 : vector<8x32xf32>
    %105 = arith.mulf %96, %102 : vector<8x32xf32>
    %106 = arith.addf %104, %105 : vector<8x32xf32>
    %107 = math.tanh %106 : vector<8x32xf32>
    %108 = arith.mulf %103, %107 : vector<8x32xf32>
    %c2_i32 = arith.constant 2 : i32
    %109 = arith.index_cast %c2_i32 : i32 to index
    %c0_36 = arith.constant 0 : index
    %c0_37 = arith.constant 0 : index
    %110 = vector.load %arg8[%109, %c0_36, %c0_37] : memref<8x8x128xf32, #tpu.memory_space<vmem>>, vector<1x8x128xf32>
    %111 = vector.shape_cast %110 : vector<1x8x128xf32> to vector<8x128xf32>
    %cst_38 = arith.constant dense<0.000000e+00> : vector<8x128xf32>
    %112 = tpu.matmul %86, %0, %cst_38 {dimension_numbers = #tpu.dot_dimension_numbers<[1], [0], [0], [1], [0, 0, 1, 1], [], []>} : vector<8x32xf32>, vector<32x128xf32>, vector<8x128xf32> -> vector<8x128xf32>
    %113 = arith.addf %111, %112 : vector<8x128xf32>
    %114 = arith.negf %113 : vector<8x128xf32>
    %115 = math.exp %114 : vector<8x128xf32>
    %cst_39 = arith.constant 1.000000e+00 : f32
    %116 = vector.broadcast %cst_39 : f32 to vector<8x128xf32>
    %117 = arith.addf %116, %115 : vector<8x128xf32>
    %118 = arith.divf %116, %117 : vector<8x128xf32>
    %119 = vector.extract_strided_slice %118 {offsets = [0, 0], sizes = [8, 32], strides = [1, 1]} : vector<8x128xf32> to vector<8x32xf32>
    %120 = vector.extract_strided_slice %118 {offsets = [0, 32], sizes = [8, 32], strides = [1, 1]} : vector<8x128xf32> to vector<8x32xf32>
    %121 = vector.extract_strided_slice %118 {offsets = [0, 64], sizes = [8, 32], strides = [1, 1]} : vector<8x128xf32> to vector<8x32xf32>
    %cst_40 = arith.constant 2.000000e+00 : f32
    %122 = vector.broadcast %cst_40 : f32 to vector<8x32xf32>
    %123 = arith.mulf %122, %121 : vector<8x32xf32>
    %cst_41 = arith.constant 1.000000e+00 : f32
    %124 = vector.broadcast %cst_41 : f32 to vector<8x32xf32>
    %125 = arith.subf %123, %124 : vector<8x32xf32>
    %126 = vector.extract_strided_slice %118 {offsets = [0, 96], sizes = [8, 32], strides = [1, 1]} : vector<8x128xf32> to vector<8x32xf32>
    %127 = arith.mulf %120, %84 : vector<8x32xf32>
    %128 = arith.mulf %119, %125 : vector<8x32xf32>
    %129 = arith.addf %127, %128 : vector<8x32xf32>
    %130 = math.tanh %129 : vector<8x32xf32>
    %131 = arith.mulf %126, %130 : vector<8x32xf32>
    %132 = tpu.concatenate %131, %108 in 1 : vector<8x32xf32>, vector<8x32xf32> -> vector<8x64xf32>
    %cst_42 = arith.constant dense<0.000000e+00> : vector<8x128xf32>
    %133 = tpu.matmul %132, %1, %cst_42 {dimension_numbers = #tpu.dot_dimension_numbers<[1], [0], [0], [1], [0, 0, 1, 1], [], []>} : vector<8x64xf32>, vector<64x128xf32>, vector<8x128xf32> -> vector<8x128xf32>
    %134 = vector.broadcast %4 : vector<1x128xf32> to vector<8x128xf32>
    %135 = arith.addf %133, %134 : vector<8x128xf32>
    %136 = arith.negf %135 : vector<8x128xf32>
    %137 = math.exp %136 : vector<8x128xf32>
    %cst_43 = arith.constant 1.000000e+00 : f32
    %138 = vector.broadcast %cst_43 : f32 to vector<8x128xf32>
    %139 = arith.addf %138, %137 : vector<8x128xf32>
    %140 = arith.divf %138, %139 : vector<8x128xf32>
    %141 = vector.extract_strided_slice %140 {offsets = [0, 0], sizes = [8, 32], strides = [1, 1]} : vector<8x128xf32> to vector<8x32xf32>
    %142 = vector.extract_strided_slice %140 {offsets = [0, 32], sizes = [8, 32], strides = [1, 1]} : vector<8x128xf32> to vector<8x32xf32>
    %143 = vector.extract_strided_slice %140 {offsets = [0, 64], sizes = [8, 32], strides = [1, 1]} : vector<8x128xf32> to vector<8x32xf32>
    %cst_44 = arith.constant 2.000000e+00 : f32
    %144 = vector.broadcast %cst_44 : f32 to vector<8x32xf32>
    %145 = arith.mulf %144, %143 : vector<8x32xf32>
    %cst_45 = arith.constant 1.000000e+00 : f32
    %146 = vector.broadcast %cst_45 : f32 to vector<8x32xf32>
    %147 = arith.subf %145, %146 : vector<8x32xf32>
    %148 = vector.extract_strided_slice %140 {offsets = [0, 96], sizes = [8, 32], strides = [1, 1]} : vector<8x128xf32> to vector<8x32xf32>
    %149 = arith.mulf %142, %106 : vector<8x32xf32>
    %150 = arith.mulf %141, %147 : vector<8x32xf32>
    %151 = arith.addf %149, %150 : vector<8x32xf32>
    %152 = math.tanh %151 : vector<8x32xf32>
    %153 = arith.mulf %148, %152 : vector<8x32xf32>
    %c3_i32 = arith.constant 3 : i32
    %154 = arith.index_cast %c3_i32 : i32 to index
    %c0_46 = arith.constant 0 : index
    %c0_47 = arith.constant 0 : index
    %155 = vector.load %arg8[%154, %c0_46, %c0_47] : memref<8x8x128xf32, #tpu.memory_space<vmem>>, vector<1x8x128xf32>
    %156 = vector.shape_cast %155 : vector<1x8x128xf32> to vector<8x128xf32>
    %cst_48 = arith.constant dense<0.000000e+00> : vector<8x128xf32>
    %157 = tpu.matmul %131, %0, %cst_48 {dimension_numbers = #tpu.dot_dimension_numbers<[1], [0], [0], [1], [0, 0, 1, 1], [], []>} : vector<8x32xf32>, vector<32x128xf32>, vector<8x128xf32> -> vector<8x128xf32>
    %158 = arith.addf %156, %157 : vector<8x128xf32>
    %159 = arith.negf %158 : vector<8x128xf32>
    %160 = math.exp %159 : vector<8x128xf32>
    %cst_49 = arith.constant 1.000000e+00 : f32
    %161 = vector.broadcast %cst_49 : f32 to vector<8x128xf32>
    %162 = arith.addf %161, %160 : vector<8x128xf32>
    %163 = arith.divf %161, %162 : vector<8x128xf32>
    %164 = vector.extract_strided_slice %163 {offsets = [0, 0], sizes = [8, 32], strides = [1, 1]} : vector<8x128xf32> to vector<8x32xf32>
    %165 = vector.extract_strided_slice %163 {offsets = [0, 32], sizes = [8, 32], strides = [1, 1]} : vector<8x128xf32> to vector<8x32xf32>
    %166 = vector.extract_strided_slice %163 {offsets = [0, 64], sizes = [8, 32], strides = [1, 1]} : vector<8x128xf32> to vector<8x32xf32>
    %cst_50 = arith.constant 2.000000e+00 : f32
    %167 = vector.broadcast %cst_50 : f32 to vector<8x32xf32>
    %168 = arith.mulf %167, %166 : vector<8x32xf32>
    %cst_51 = arith.constant 1.000000e+00 : f32
    %169 = vector.broadcast %cst_51 : f32 to vector<8x32xf32>
    %170 = arith.subf %168, %169 : vector<8x32xf32>
    %171 = vector.extract_strided_slice %163 {offsets = [0, 96], sizes = [8, 32], strides = [1, 1]} : vector<8x128xf32> to vector<8x32xf32>
    %172 = arith.mulf %165, %129 : vector<8x32xf32>
    %173 = arith.mulf %164, %170 : vector<8x32xf32>
    %174 = arith.addf %172, %173 : vector<8x32xf32>
    %175 = math.tanh %174 : vector<8x32xf32>
    %176 = arith.mulf %171, %175 : vector<8x32xf32>
    %177 = tpu.concatenate %176, %153 in 1 : vector<8x32xf32>, vector<8x32xf32> -> vector<8x64xf32>
    %cst_52 = arith.constant dense<0.000000e+00> : vector<8x128xf32>
    %178 = tpu.matmul %177, %1, %cst_52 {dimension_numbers = #tpu.dot_dimension_numbers<[1], [0], [0], [1], [0, 0, 1, 1], [], []>} : vector<8x64xf32>, vector<64x128xf32>, vector<8x128xf32> -> vector<8x128xf32>
    %179 = vector.broadcast %4 : vector<1x128xf32> to vector<8x128xf32>
    %180 = arith.addf %178, %179 : vector<8x128xf32>
    %181 = arith.negf %180 : vector<8x128xf32>
    %182 = math.exp %181 : vector<8x128xf32>
    %cst_53 = arith.constant 1.000000e+00 : f32
    %183 = vector.broadcast %cst_53 : f32 to vector<8x128xf32>
    %184 = arith.addf %183, %182 : vector<8x128xf32>
    %185 = arith.divf %183, %184 : vector<8x128xf32>
    %186 = vector.extract_strided_slice %185 {offsets = [0, 0], sizes = [8, 32], strides = [1, 1]} : vector<8x128xf32> to vector<8x32xf32>
    %187 = vector.extract_strided_slice %185 {offsets = [0, 32], sizes = [8, 32], strides = [1, 1]} : vector<8x128xf32> to vector<8x32xf32>
    %188 = vector.extract_strided_slice %185 {offsets = [0, 64], sizes = [8, 32], strides = [1, 1]} : vector<8x128xf32> to vector<8x32xf32>
    %cst_54 = arith.constant 2.000000e+00 : f32
    %189 = vector.broadcast %cst_54 : f32 to vector<8x32xf32>
    %190 = arith.mulf %189, %188 : vector<8x32xf32>
    %cst_55 = arith.constant 1.000000e+00 : f32
    %191 = vector.broadcast %cst_55 : f32 to vector<8x32xf32>
    %192 = arith.subf %190, %191 : vector<8x32xf32>
    %193 = vector.extract_strided_slice %185 {offsets = [0, 96], sizes = [8, 32], strides = [1, 1]} : vector<8x128xf32> to vector<8x32xf32>
    %194 = arith.mulf %187, %151 : vector<8x32xf32>
    %195 = arith.mulf %186, %192 : vector<8x32xf32>
    %196 = arith.addf %194, %195 : vector<8x32xf32>
    %197 = math.tanh %196 : vector<8x32xf32>
    %198 = arith.mulf %193, %197 : vector<8x32xf32>
    %c4_i32 = arith.constant 4 : i32
    %199 = arith.index_cast %c4_i32 : i32 to index
    %c0_56 = arith.constant 0 : index
    %c0_57 = arith.constant 0 : index
    %200 = vector.load %arg8[%199, %c0_56, %c0_57] : memref<8x8x128xf32, #tpu.memory_space<vmem>>, vector<1x8x128xf32>
    %201 = vector.shape_cast %200 : vector<1x8x128xf32> to vector<8x128xf32>
    %cst_58 = arith.constant dense<0.000000e+00> : vector<8x128xf32>
    %202 = tpu.matmul %176, %0, %cst_58 {dimension_numbers = #tpu.dot_dimension_numbers<[1], [0], [0], [1], [0, 0, 1, 1], [], []>} : vector<8x32xf32>, vector<32x128xf32>, vector<8x128xf32> -> vector<8x128xf32>
    %203 = arith.addf %201, %202 : vector<8x128xf32>
    %204 = arith.negf %203 : vector<8x128xf32>
    %205 = math.exp %204 : vector<8x128xf32>
    %cst_59 = arith.constant 1.000000e+00 : f32
    %206 = vector.broadcast %cst_59 : f32 to vector<8x128xf32>
    %207 = arith.addf %206, %205 : vector<8x128xf32>
    %208 = arith.divf %206, %207 : vector<8x128xf32>
    %209 = vector.extract_strided_slice %208 {offsets = [0, 0], sizes = [8, 32], strides = [1, 1]} : vector<8x128xf32> to vector<8x32xf32>
    %210 = vector.extract_strided_slice %208 {offsets = [0, 32], sizes = [8, 32], strides = [1, 1]} : vector<8x128xf32> to vector<8x32xf32>
    %211 = vector.extract_strided_slice %208 {offsets = [0, 64], sizes = [8, 32], strides = [1, 1]} : vector<8x128xf32> to vector<8x32xf32>
    %cst_60 = arith.constant 2.000000e+00 : f32
    %212 = vector.broadcast %cst_60 : f32 to vector<8x32xf32>
    %213 = arith.mulf %212, %211 : vector<8x32xf32>
    %cst_61 = arith.constant 1.000000e+00 : f32
    %214 = vector.broadcast %cst_61 : f32 to vector<8x32xf32>
    %215 = arith.subf %213, %214 : vector<8x32xf32>
    %216 = vector.extract_strided_slice %208 {offsets = [0, 96], sizes = [8, 32], strides = [1, 1]} : vector<8x128xf32> to vector<8x32xf32>
    %217 = arith.mulf %210, %174 : vector<8x32xf32>
    %218 = arith.mulf %209, %215 : vector<8x32xf32>
    %219 = arith.addf %217, %218 : vector<8x32xf32>
    %220 = math.tanh %219 : vector<8x32xf32>
    %221 = arith.mulf %216, %220 : vector<8x32xf32>
    %222 = tpu.concatenate %221, %198 in 1 : vector<8x32xf32>, vector<8x32xf32> -> vector<8x64xf32>
    %cst_62 = arith.constant dense<0.000000e+00> : vector<8x128xf32>
    %223 = tpu.matmul %222, %1, %cst_62 {dimension_numbers = #tpu.dot_dimension_numbers<[1], [0], [0], [1], [0, 0, 1, 1], [], []>} : vector<8x64xf32>, vector<64x128xf32>, vector<8x128xf32> -> vector<8x128xf32>
    %224 = vector.broadcast %4 : vector<1x128xf32> to vector<8x128xf32>
    %225 = arith.addf %223, %224 : vector<8x128xf32>
    %226 = arith.negf %225 : vector<8x128xf32>
    %227 = math.exp %226 : vector<8x128xf32>
    %cst_63 = arith.constant 1.000000e+00 : f32
    %228 = vector.broadcast %cst_63 : f32 to vector<8x128xf32>
    %229 = arith.addf %228, %227 : vector<8x128xf32>
    %230 = arith.divf %228, %229 : vector<8x128xf32>
    %231 = vector.extract_strided_slice %230 {offsets = [0, 0], sizes = [8, 32], strides = [1, 1]} : vector<8x128xf32> to vector<8x32xf32>
    %232 = vector.extract_strided_slice %230 {offsets = [0, 32], sizes = [8, 32], strides = [1, 1]} : vector<8x128xf32> to vector<8x32xf32>
    %233 = vector.extract_strided_slice %230 {offsets = [0, 64], sizes = [8, 32], strides = [1, 1]} : vector<8x128xf32> to vector<8x32xf32>
    %cst_64 = arith.constant 2.000000e+00 : f32
    %234 = vector.broadcast %cst_64 : f32 to vector<8x32xf32>
    %235 = arith.mulf %234, %233 : vector<8x32xf32>
    %cst_65 = arith.constant 1.000000e+00 : f32
    %236 = vector.broadcast %cst_65 : f32 to vector<8x32xf32>
    %237 = arith.subf %235, %236 : vector<8x32xf32>
    %238 = vector.extract_strided_slice %230 {offsets = [0, 96], sizes = [8, 32], strides = [1, 1]} : vector<8x128xf32> to vector<8x32xf32>
    %239 = arith.mulf %232, %196 : vector<8x32xf32>
    %240 = arith.mulf %231, %237 : vector<8x32xf32>
    %241 = arith.addf %239, %240 : vector<8x32xf32>
    %242 = math.tanh %241 : vector<8x32xf32>
    %243 = arith.mulf %238, %242 : vector<8x32xf32>
    %c5_i32 = arith.constant 5 : i32
    %244 = arith.index_cast %c5_i32 : i32 to index
    %c0_66 = arith.constant 0 : index
    %c0_67 = arith.constant 0 : index
    %245 = vector.load %arg8[%244, %c0_66, %c0_67] : memref<8x8x128xf32, #tpu.memory_space<vmem>>, vector<1x8x128xf32>
    %246 = vector.shape_cast %245 : vector<1x8x128xf32> to vector<8x128xf32>
    %cst_68 = arith.constant dense<0.000000e+00> : vector<8x128xf32>
    %247 = tpu.matmul %221, %0, %cst_68 {dimension_numbers = #tpu.dot_dimension_numbers<[1], [0], [0], [1], [0, 0, 1, 1], [], []>} : vector<8x32xf32>, vector<32x128xf32>, vector<8x128xf32> -> vector<8x128xf32>
    %248 = arith.addf %246, %247 : vector<8x128xf32>
    %249 = arith.negf %248 : vector<8x128xf32>
    %250 = math.exp %249 : vector<8x128xf32>
    %cst_69 = arith.constant 1.000000e+00 : f32
    %251 = vector.broadcast %cst_69 : f32 to vector<8x128xf32>
    %252 = arith.addf %251, %250 : vector<8x128xf32>
    %253 = arith.divf %251, %252 : vector<8x128xf32>
    %254 = vector.extract_strided_slice %253 {offsets = [0, 0], sizes = [8, 32], strides = [1, 1]} : vector<8x128xf32> to vector<8x32xf32>
    %255 = vector.extract_strided_slice %253 {offsets = [0, 32], sizes = [8, 32], strides = [1, 1]} : vector<8x128xf32> to vector<8x32xf32>
    %256 = vector.extract_strided_slice %253 {offsets = [0, 64], sizes = [8, 32], strides = [1, 1]} : vector<8x128xf32> to vector<8x32xf32>
    %cst_70 = arith.constant 2.000000e+00 : f32
    %257 = vector.broadcast %cst_70 : f32 to vector<8x32xf32>
    %258 = arith.mulf %257, %256 : vector<8x32xf32>
    %cst_71 = arith.constant 1.000000e+00 : f32
    %259 = vector.broadcast %cst_71 : f32 to vector<8x32xf32>
    %260 = arith.subf %258, %259 : vector<8x32xf32>
    %261 = vector.extract_strided_slice %253 {offsets = [0, 96], sizes = [8, 32], strides = [1, 1]} : vector<8x128xf32> to vector<8x32xf32>
    %262 = arith.mulf %255, %219 : vector<8x32xf32>
    %263 = arith.mulf %254, %260 : vector<8x32xf32>
    %264 = arith.addf %262, %263 : vector<8x32xf32>
    %265 = math.tanh %264 : vector<8x32xf32>
    %266 = arith.mulf %261, %265 : vector<8x32xf32>
    %267 = tpu.concatenate %266, %243 in 1 : vector<8x32xf32>, vector<8x32xf32> -> vector<8x64xf32>
    %cst_72 = arith.constant dense<0.000000e+00> : vector<8x128xf32>
    %268 = tpu.matmul %267, %1, %cst_72 {dimension_numbers = #tpu.dot_dimension_numbers<[1], [0], [0], [1], [0, 0, 1, 1], [], []>} : vector<8x64xf32>, vector<64x128xf32>, vector<8x128xf32> -> vector<8x128xf32>
    %269 = vector.broadcast %4 : vector<1x128xf32> to vector<8x128xf32>
    %270 = arith.addf %268, %269 : vector<8x128xf32>
    %271 = arith.negf %270 : vector<8x128xf32>
    %272 = math.exp %271 : vector<8x128xf32>
    %cst_73 = arith.constant 1.000000e+00 : f32
    %273 = vector.broadcast %cst_73 : f32 to vector<8x128xf32>
    %274 = arith.addf %273, %272 : vector<8x128xf32>
    %275 = arith.divf %273, %274 : vector<8x128xf32>
    %276 = vector.extract_strided_slice %275 {offsets = [0, 0], sizes = [8, 32], strides = [1, 1]} : vector<8x128xf32> to vector<8x32xf32>
    %277 = vector.extract_strided_slice %275 {offsets = [0, 32], sizes = [8, 32], strides = [1, 1]} : vector<8x128xf32> to vector<8x32xf32>
    %278 = vector.extract_strided_slice %275 {offsets = [0, 64], sizes = [8, 32], strides = [1, 1]} : vector<8x128xf32> to vector<8x32xf32>
    %cst_74 = arith.constant 2.000000e+00 : f32
    %279 = vector.broadcast %cst_74 : f32 to vector<8x32xf32>
    %280 = arith.mulf %279, %278 : vector<8x32xf32>
    %cst_75 = arith.constant 1.000000e+00 : f32
    %281 = vector.broadcast %cst_75 : f32 to vector<8x32xf32>
    %282 = arith.subf %280, %281 : vector<8x32xf32>
    %283 = vector.extract_strided_slice %275 {offsets = [0, 96], sizes = [8, 32], strides = [1, 1]} : vector<8x128xf32> to vector<8x32xf32>
    %284 = arith.mulf %277, %241 : vector<8x32xf32>
    %285 = arith.mulf %276, %282 : vector<8x32xf32>
    %286 = arith.addf %284, %285 : vector<8x32xf32>
    %287 = math.tanh %286 : vector<8x32xf32>
    %288 = arith.mulf %283, %287 : vector<8x32xf32>
    %c6_i32 = arith.constant 6 : i32
    %289 = arith.index_cast %c6_i32 : i32 to index
    %c0_76 = arith.constant 0 : index
    %c0_77 = arith.constant 0 : index
    %290 = vector.load %arg8[%289, %c0_76, %c0_77] : memref<8x8x128xf32, #tpu.memory_space<vmem>>, vector<1x8x128xf32>
    %291 = vector.shape_cast %290 : vector<1x8x128xf32> to vector<8x128xf32>
    %cst_78 = arith.constant dense<0.000000e+00> : vector<8x128xf32>
    %292 = tpu.matmul %266, %0, %cst_78 {dimension_numbers = #tpu.dot_dimension_numbers<[1], [0], [0], [1], [0, 0, 1, 1], [], []>} : vector<8x32xf32>, vector<32x128xf32>, vector<8x128xf32> -> vector<8x128xf32>
    %293 = arith.addf %291, %292 : vector<8x128xf32>
    %294 = arith.negf %293 : vector<8x128xf32>
    %295 = math.exp %294 : vector<8x128xf32>
    %cst_79 = arith.constant 1.000000e+00 : f32
    %296 = vector.broadcast %cst_79 : f32 to vector<8x128xf32>
    %297 = arith.addf %296, %295 : vector<8x128xf32>
    %298 = arith.divf %296, %297 : vector<8x128xf32>
    %299 = vector.extract_strided_slice %298 {offsets = [0, 0], sizes = [8, 32], strides = [1, 1]} : vector<8x128xf32> to vector<8x32xf32>
    %300 = vector.extract_strided_slice %298 {offsets = [0, 32], sizes = [8, 32], strides = [1, 1]} : vector<8x128xf32> to vector<8x32xf32>
    %301 = vector.extract_strided_slice %298 {offsets = [0, 64], sizes = [8, 32], strides = [1, 1]} : vector<8x128xf32> to vector<8x32xf32>
    %cst_80 = arith.constant 2.000000e+00 : f32
    %302 = vector.broadcast %cst_80 : f32 to vector<8x32xf32>
    %303 = arith.mulf %302, %301 : vector<8x32xf32>
    %cst_81 = arith.constant 1.000000e+00 : f32
    %304 = vector.broadcast %cst_81 : f32 to vector<8x32xf32>
    %305 = arith.subf %303, %304 : vector<8x32xf32>
    %306 = vector.extract_strided_slice %298 {offsets = [0, 96], sizes = [8, 32], strides = [1, 1]} : vector<8x128xf32> to vector<8x32xf32>
    %307 = arith.mulf %300, %264 : vector<8x32xf32>
    %308 = arith.mulf %299, %305 : vector<8x32xf32>
    %309 = arith.addf %307, %308 : vector<8x32xf32>
    %310 = math.tanh %309 : vector<8x32xf32>
    %311 = arith.mulf %306, %310 : vector<8x32xf32>
    %312 = tpu.concatenate %311, %288 in 1 : vector<8x32xf32>, vector<8x32xf32> -> vector<8x64xf32>
    %cst_82 = arith.constant dense<0.000000e+00> : vector<8x128xf32>
    %313 = tpu.matmul %312, %1, %cst_82 {dimension_numbers = #tpu.dot_dimension_numbers<[1], [0], [0], [1], [0, 0, 1, 1], [], []>} : vector<8x64xf32>, vector<64x128xf32>, vector<8x128xf32> -> vector<8x128xf32>
    %314 = vector.broadcast %4 : vector<1x128xf32> to vector<8x128xf32>
    %315 = arith.addf %313, %314 : vector<8x128xf32>
    %316 = arith.negf %315 : vector<8x128xf32>
    %317 = math.exp %316 : vector<8x128xf32>
    %cst_83 = arith.constant 1.000000e+00 : f32
    %318 = vector.broadcast %cst_83 : f32 to vector<8x128xf32>
    %319 = arith.addf %318, %317 : vector<8x128xf32>
    %320 = arith.divf %318, %319 : vector<8x128xf32>
    %321 = vector.extract_strided_slice %320 {offsets = [0, 0], sizes = [8, 32], strides = [1, 1]} : vector<8x128xf32> to vector<8x32xf32>
    %322 = vector.extract_strided_slice %320 {offsets = [0, 32], sizes = [8, 32], strides = [1, 1]} : vector<8x128xf32> to vector<8x32xf32>
    %323 = vector.extract_strided_slice %320 {offsets = [0, 64], sizes = [8, 32], strides = [1, 1]} : vector<8x128xf32> to vector<8x32xf32>
    %cst_84 = arith.constant 2.000000e+00 : f32
    %324 = vector.broadcast %cst_84 : f32 to vector<8x32xf32>
    %325 = arith.mulf %324, %323 : vector<8x32xf32>
    %cst_85 = arith.constant 1.000000e+00 : f32
    %326 = vector.broadcast %cst_85 : f32 to vector<8x32xf32>
    %327 = arith.subf %325, %326 : vector<8x32xf32>
    %328 = vector.extract_strided_slice %320 {offsets = [0, 96], sizes = [8, 32], strides = [1, 1]} : vector<8x128xf32> to vector<8x32xf32>
    %329 = arith.mulf %322, %286 : vector<8x32xf32>
    %330 = arith.mulf %321, %327 : vector<8x32xf32>
    %331 = arith.addf %329, %330 : vector<8x32xf32>
    %332 = math.tanh %331 : vector<8x32xf32>
    %333 = arith.mulf %328, %332 : vector<8x32xf32>
    %c7_i32 = arith.constant 7 : i32
    %334 = arith.index_cast %c7_i32 : i32 to index
    %c0_86 = arith.constant 0 : index
    %c0_87 = arith.constant 0 : index
    %335 = vector.load %arg8[%334, %c0_86, %c0_87] : memref<8x8x128xf32, #tpu.memory_space<vmem>>, vector<1x8x128xf32>
    %336 = vector.shape_cast %335 : vector<1x8x128xf32> to vector<8x128xf32>
    %cst_88 = arith.constant dense<0.000000e+00> : vector<8x128xf32>
    %337 = tpu.matmul %311, %0, %cst_88 {dimension_numbers = #tpu.dot_dimension_numbers<[1], [0], [0], [1], [0, 0, 1, 1], [], []>} : vector<8x32xf32>, vector<32x128xf32>, vector<8x128xf32> -> vector<8x128xf32>
    %338 = arith.addf %336, %337 : vector<8x128xf32>
    %339 = arith.negf %338 : vector<8x128xf32>
    %340 = math.exp %339 : vector<8x128xf32>
    %cst_89 = arith.constant 1.000000e+00 : f32
    %341 = vector.broadcast %cst_89 : f32 to vector<8x128xf32>
    %342 = arith.addf %341, %340 : vector<8x128xf32>
    %343 = arith.divf %341, %342 : vector<8x128xf32>
    %344 = vector.extract_strided_slice %343 {offsets = [0, 0], sizes = [8, 32], strides = [1, 1]} : vector<8x128xf32> to vector<8x32xf32>
    %345 = vector.extract_strided_slice %343 {offsets = [0, 32], sizes = [8, 32], strides = [1, 1]} : vector<8x128xf32> to vector<8x32xf32>
    %346 = vector.extract_strided_slice %343 {offsets = [0, 64], sizes = [8, 32], strides = [1, 1]} : vector<8x128xf32> to vector<8x32xf32>
    %cst_90 = arith.constant 2.000000e+00 : f32
    %347 = vector.broadcast %cst_90 : f32 to vector<8x32xf32>
    %348 = arith.mulf %347, %346 : vector<8x32xf32>
    %cst_91 = arith.constant 1.000000e+00 : f32
    %349 = vector.broadcast %cst_91 : f32 to vector<8x32xf32>
    %350 = arith.subf %348, %349 : vector<8x32xf32>
    %351 = vector.extract_strided_slice %343 {offsets = [0, 96], sizes = [8, 32], strides = [1, 1]} : vector<8x128xf32> to vector<8x32xf32>
    %352 = arith.mulf %345, %309 : vector<8x32xf32>
    %353 = arith.mulf %344, %350 : vector<8x32xf32>
    %354 = arith.addf %352, %353 : vector<8x32xf32>
    %355 = math.tanh %354 : vector<8x32xf32>
    %356 = arith.mulf %351, %355 : vector<8x32xf32>
    %357 = tpu.concatenate %356, %333 in 1 : vector<8x32xf32>, vector<8x32xf32> -> vector<8x64xf32>
    %cst_92 = arith.constant dense<0.000000e+00> : vector<8x128xf32>
    %358 = tpu.matmul %357, %1, %cst_92 {dimension_numbers = #tpu.dot_dimension_numbers<[1], [0], [0], [1], [0, 0, 1, 1], [], []>} : vector<8x64xf32>, vector<64x128xf32>, vector<8x128xf32> -> vector<8x128xf32>
    %359 = vector.broadcast %4 : vector<1x128xf32> to vector<8x128xf32>
    %360 = arith.addf %358, %359 : vector<8x128xf32>
    %361 = arith.negf %360 : vector<8x128xf32>
    %362 = math.exp %361 : vector<8x128xf32>
    %cst_93 = arith.constant 1.000000e+00 : f32
    %363 = vector.broadcast %cst_93 : f32 to vector<8x128xf32>
    %364 = arith.addf %363, %362 : vector<8x128xf32>
    %365 = arith.divf %363, %364 : vector<8x128xf32>
    %366 = vector.extract_strided_slice %365 {offsets = [0, 0], sizes = [8, 32], strides = [1, 1]} : vector<8x128xf32> to vector<8x32xf32>
    %367 = vector.extract_strided_slice %365 {offsets = [0, 32], sizes = [8, 32], strides = [1, 1]} : vector<8x128xf32> to vector<8x32xf32>
    %368 = vector.extract_strided_slice %365 {offsets = [0, 64], sizes = [8, 32], strides = [1, 1]} : vector<8x128xf32> to vector<8x32xf32>
    %cst_94 = arith.constant 2.000000e+00 : f32
    %369 = vector.broadcast %cst_94 : f32 to vector<8x32xf32>
    %370 = arith.mulf %369, %368 : vector<8x32xf32>
    %cst_95 = arith.constant 1.000000e+00 : f32
    %371 = vector.broadcast %cst_95 : f32 to vector<8x32xf32>
    %372 = arith.subf %370, %371 : vector<8x32xf32>
    %373 = vector.extract_strided_slice %365 {offsets = [0, 96], sizes = [8, 32], strides = [1, 1]} : vector<8x128xf32> to vector<8x32xf32>
    %374 = arith.mulf %367, %331 : vector<8x32xf32>
    %375 = arith.mulf %366, %372 : vector<8x32xf32>
    %376 = arith.addf %374, %375 : vector<8x32xf32>
    %377 = math.tanh %376 : vector<8x32xf32>
    %378 = arith.mulf %373, %377 : vector<8x32xf32>
    %c8_i32 = arith.constant 8 : i32
    %c0_96 = arith.constant 0 : index
    %c0_97 = arith.constant 0 : index
    %379 = vector.load %arg5[%c0_96, %c0_97] : memref<48x64xf32, #tpu.memory_space<vmem>>, vector<11x64xf32>
    %c16 = arith.constant 16 : index
    %c0_98 = arith.constant 0 : index
    %380 = vector.load %arg5[%c16, %c0_98] : memref<48x64xf32, #tpu.memory_space<vmem>>, vector<32x64xf32>
    %c96_99 = arith.constant 96 : index
    %c0_100 = arith.constant 0 : index
    %381 = vector.load %arg4[%c96_99, %c0_100] : memref<128x128xf32, #tpu.memory_space<vmem>>, vector<32x128xf32>
    %c3 = arith.constant 3 : index
    %c0_101 = arith.constant 0 : index
    %382 = vector.load %arg3[%c3, %c0_101] : memref<8x128xf32, #tpu.memory_space<vmem>>, vector<1x64xf32>
    %c4 = arith.constant 4 : index
    %c0_102 = arith.constant 0 : index
    %383 = vector.load %arg3[%c4, %c0_102] : memref<8x128xf32, #tpu.memory_space<vmem>>, vector<1x32xf32>
    %c5 = arith.constant 5 : index
    %c0_103 = arith.constant 0 : index
    %384 = vector.load %arg3[%c5, %c0_103] : memref<8x128xf32, #tpu.memory_space<vmem>>, vector<1x128xf32>
    %c0_104 = arith.constant 0 : index
    %c0_105 = arith.constant 0 : index
    %385 = vector.load %arg2[%c0_104, %c0_105] : memref<8x11xf32, #tpu.memory_space<vmem>>, vector<8x11xf32>
    %cst_106 = arith.constant dense<0.000000e+00> : vector<8x64xf32>
    %386 = tpu.matmul %385, %379, %cst_106 {dimension_numbers = #tpu.dot_dimension_numbers<[1], [0], [0], [1], [0, 0, 1, 1], [], []>} : vector<8x11xf32>, vector<11x64xf32>, vector<8x64xf32> -> vector<8x64xf32>
    %cst_107 = arith.constant dense<0.000000e+00> : vector<8x64xf32>
    %387 = tpu.matmul %378, %380, %cst_107 {dimension_numbers = #tpu.dot_dimension_numbers<[1], [0], [0], [1], [0, 0, 1, 1], [], []>} : vector<8x32xf32>, vector<32x64xf32>, vector<8x64xf32> -> vector<8x64xf32>
    %388 = arith.addf %386, %387 : vector<8x64xf32>
    %389 = vector.broadcast %382 : vector<1x64xf32> to vector<8x64xf32>
    %390 = arith.addf %388, %389 : vector<8x64xf32>
    %cst_108 = arith.constant 0.000000e+00 : f32
    %391 = vector.broadcast %cst_108 : f32 to vector<8x64xf32>
    %392 = arith.maximumf %390, %391 : vector<8x64xf32>
    %c0_109 = arith.constant 0 : index
    %c0_110 = arith.constant 0 : index
    %393 = vector.load %arg6[%c0_109, %c0_110] : memref<64x32xf32, #tpu.memory_space<vmem>>, vector<64x32xf32>
    %cst_111 = arith.constant dense<0.000000e+00> : vector<8x32xf32>
    %394 = tpu.matmul %392, %393, %cst_111 {dimension_numbers = #tpu.dot_dimension_numbers<[1], [0], [0], [1], [0, 0, 1, 1], [], []>} : vector<8x64xf32>, vector<64x32xf32>, vector<8x32xf32> -> vector<8x32xf32>
    %395 = vector.broadcast %383 : vector<1x32xf32> to vector<8x32xf32>
    %396 = arith.addf %394, %395 : vector<8x32xf32>
    %cst_112 = arith.constant 0.000000e+00 : f32
    %397 = vector.broadcast %cst_112 : f32 to vector<8x32xf32>
    %398 = arith.maximumf %396, %397 : vector<8x32xf32>
    %cst_113 = arith.constant dense<0.000000e+00> : vector<8x128xf32>
    %399 = tpu.matmul %398, %381, %cst_113 {dimension_numbers = #tpu.dot_dimension_numbers<[1], [0], [0], [1], [0, 0, 1, 1], [], []>} : vector<8x32xf32>, vector<32x128xf32>, vector<8x128xf32> -> vector<8x128xf32>
    %400 = vector.broadcast %384 : vector<1x128xf32> to vector<8x128xf32>
    %401 = arith.addf %399, %400 : vector<8x128xf32>
    %c0_114 = arith.constant 0 : index
    %c0_115 = arith.constant 0 : index
    %402 = vector.load %arg7[%c0_114, %c0_115] : memref<8x128xf32, #tpu.memory_space<vmem>>, vector<8x128xf32>
    tpu.vector_store %arg7[%c0_114, %c0_115], %401 {strides = array<i32>} : memref<8x128xf32, #tpu.memory_space<vmem>>, vector<8x128xf32>,
    return
  }
}

</mosaic_0001>

<bundles_post_ra>
// kernel: lstm_hybrid_forward.1
= control target key start
LH: loop header
LB: loop body
LE: loop exit
PB: predicated region body
PF: predicated region fallthrough
CT: control target
= control target key end

     0   :  { %v2893_v0 = vmov 0.0|0.0   ;;  %vm2894_vm0 = vmmov 0   ;;  %v2895_v4 = vmov 0.0   ;;  %v42_v5 = vlaneseq  ;;  %s2896_s11 = smov 96   ;;  %s2897_s16 = smov 64   ;;  %s3419_s4 = inlined_call_operand.vmem [shape: f32[128,128], index: 4, kind: input, shape index: {}]   ;;  %s3420_s1 = inlined_call_operand.vmem [shape: f32[8,128], index: 1, kind: input, shape index: {}]   ;;  %s3421_s0 = inlined_call_operand.vmem [shape: f32[8,8], index: 0, kind: input, shape index: {}]   ;;  %s3422_s3 = inlined_call_operand.vmem [shape: f32[8,128], index: 3, kind: input, shape index: {}]   ;;  %s3423_s5 = inlined_call_operand.vmem [shape: f32[48,64], index: 5, kind: input, shape index: {}]   ;;  %s3424_s6 = inlined_call_operand.vmem [shape: f32[64,32], index: 6, kind: input, shape index: {}]   ;;  %s3425_s2 = inlined_call_operand.vmem [shape: f32[8,11], index: 2, kind: input, shape index: {}]   ;;  %s3426_s7 = inlined_call_operand.vmem [shape: f32[8,128], index: 7, kind: output, shape index: {}]  }
   0x1   :  { %2617 = vmatprep.subr.bf16.mxu0 %v2893_v0  ;;  %v26_v1 = vld [vmem:[%s3419_s4] sm:$0xff]  ;;  %v27_v2 = vld [vmem:[%s3419_s4 + $0x8] sm:$0xff]  ;;  %v28_v3 = vld [vmem:[%s3419_s4 + $0x10] sm:$0xff]  ;;  %2337 = vmatprep.mubr.msk.f32.mxu0 %vm2894_vm0, %v2895_v4  ;;  %vm132_vm1 = vcmask 261120   ;;  %s2898_s17 = smov 32   ;;  %vm244_vm2 = vcmask 523264  }
   0x2   :  { %v2952_v6 = vpack.c.bf16 %v27_v2, %v26_v1  ;;  %v29_v7 = vld [vmem:[%s3419_s4 + $0x18] sm:$0xff]  ;;  %v2960_v8 = vld [vmem:[%s3420_s1] sm:$0xff]  ;;  %2623 = vmatprep.subr.bf16.mxu1 %v2893_v0  ;;  %2356 = vmatprep.mubr.msk.f32.mxu1 %vm2894_vm0, %v2895_v4  ;;  %v2965_v9 = vshrl.u32 %v42_v5, 7  ;;  %v31_v35 = vld [vmem:[%s3419_s4 + $0x28] sm:$0xff]  ;;  %vm1888_vm3 = vcmask 1042432   ;;  %vm2899_vm4 = vmmov 1  }
   0x3   :  { %215 = vrot.lane.b32.xlu1 %v2960_v8, %s2896_s11  ;;  %v2969_v10 = vpack.c.bf16 %v29_v7, %v28_v3  ;;  %v2974_v11 = vld [vmem:[%s3421_s0] sm:$0xff]  ;;  %v32_v36 = vld [vmem:[%s3419_s4 + $0x30] sm:$0xff]  ;;  %v33_v38 = vld [vmem:[%s3419_s4 + $0x38] sm:$0xff]  ;;  %vm1884_vm6 = vcmask 89088  }
   0x4   :  { %2619 = vmatpush3.bf16.msra.mxu0 %v2952_v6  ;;  %v44_v12 = vsub.s32 0, %v2965_v9  ;;  %v2992_v14 = vld [vmem:[%s3422_s3] ss:$0 sm:$0xff]  ;;  %v2998_v17 = vld [vmem:[%s3422_s3 + $0x1] ss:$0 sm:$0xff]  ;;  %v3021_v39 = vpack.c.bf16 %v33_v38, %v32_v36  ;;  %v35_v41 = vld [vmem:[%s3419_s4 + $0x48] sm:$0xff] }
   0x5   :  { %2620 = vmatprep.subr.bf16.mxu0 %v2893_v0  ;;  %v30_v34 = vld [vmem:[%s3419_s4 + $0x20] sm:$0xff]  ;;  %v36_v43 = vld [vmem:[%s3419_s4 + $0x50] sm:$0xff]  ;;  %v37_v44 = vld [vmem:[%s3419_s4 + $0x58] sm:$0xff]  ;;  %v51_v47 = vsub.s32 1, %v2965_v9 }
   0x6   :  { %v45_v13 = vrot.slane %v2974_v11, %v44_v12  ;;  %v3015_v37 = vpack.c.bf16 %v31_v35, %v30_v34  ;;  %v34_v40 = vld [vmem:[%s3419_s4 + $0x40] sm:$0xff]  ;;  %v3042_v46 = vpack.c.bf16 %v37_v44, %v36_v43  ;;  %vm2769_vm5 = vmpackc.low %vm1888_vm3, %vm2899_vm4 }
   0x7   :  { %v3031_v42 = vpack.c.bf16 %v35_v41, %v34_v40  ;;  %v52_v48 = vrot.slane %v2974_v11, %v51_v47  ;;  %v3075_v56 = vld [vmem:[%s3422_s3 + $0x2] ss:$0 sm:$0xff] }
   0x8   :  { %2622 = vmatpush3.bf16.msra.mxu0 %v2969_v10  ;;  %47 = vbcast.lane.b32.xlu0 %v45_v13, 256 }
   0x9   :  { %2635 = vmatprep.subr.bf16.mxu0 %v2893_v0  ;;  %2625 = vmatpush3.bf16.msra.mxu1 %v3015_v37 }
   0xa   :  { %2626 = vmatprep.subr.bf16.mxu1 %v2893_v0 }
   0xb   :  { %2338 = vmatmul.mubr.msk.f32.vlgmr.msra.gmra.mrb[0].mxu0 %vm132_vm1, %v2960_v8 }
   0xc   :  { %2637 = vmatpush3.bf16.msra.mxu0 %v2952_v6  ;;  %2367 = vmatprep.mubr.msk.f32.mxu0 %vm2894_vm0, %v2895_v4 }
   0xd   :  { %2638 = vmatprep.subr.bf16.mxu0 %v2893_v0  ;;  %2628 = vmatpush3.bf16.msra.mxu1 %v3021_v39 }
   0xe   :  { %2629 = vmatprep.subr.bf16.mxu1 %v2893_v0 }
  0x10   :  { %2640 = vmatpush3.bf16.msra.mxu0 %v2969_v10 }
  0x11   :  { %2641 = vmatprep.subr.bf16.mxu0 %v2893_v0  ;;  %2631 = vmatpush3.bf16.msra.mxu1 %v3031_v42 }
  0x12   :  { %2632 = vmatprep.subr.bf16.mxu1 %v2893_v0 }
  0x15   :  { %2634 = vmatpush3.bf16.msra.mxu1 %v3042_v46 }
  0x16   :  { %2653 = vmatprep.subr.bf16.mxu1 %v2893_v0 }
  0x75   :  { %v216_v30 = vpop.permute.xlu1 %215 }
  0x7a   :  { %v48_v15 = vpop.permute.xlu0 %47 }
  0x7b   :  { %v102_v16 = vmul.f32 %v2992_v14, %v48_v15 }
  0x7d   :  { %v114_v18 = vadd.f32 %v2998_v17, %v102_v16 }
  0xde   :  { %v202_v19 = vpop.f32.mrb[0].mxu0 }
  0xdf   :  { %v206_v20 = vadd.f32 %v202_v19, %v114_v18  ;;  %v2339_v21 = vpop.f32.mrb[1].mxu0 }
  0xe1   :  { %v2139_v22 = vmul.f32 -1.442695, %v206_v20 }
  0xe3   :  { %2796 = vpow2.f32 %v2139_v22 }
  0xed   :  { %v2797_v23 = vpop.eup %2796 }
  0xee   :  { %v210_v24 = vadd.f32 1.0, %v2797_v23 }
  0xf0   :  { %2798 = vrcp.f32 %v210_v24 }
  0xfa   :  { %v2799_v25 = vpop.eup %2798 }
  0xfb   :  { %v213_v26 = vmul.f32 2.0, %v2799_v25  ;;  %v218_v31 = vmul.f32 %v2799_v25, %v216_v30 }
  0xfd   :  { %v2140_v27 = vadd.f32 -1.0, %v213_v26 }
  0xff   :  { %220 = vrot.lane.b32.xlu0 %v2140_v27, %s2897_s16 }
 0x171   :  { %v221_v28 = vpop.permute.xlu0 %220 }
 0x172   :  { %v223_v29 = vmul.f32 %v2799_v25, %v221_v28 }
 0x174   :  { %225 = vrot.lane.b32.xlu1 %v223_v29, %s2898_s17 }
 0x1e6   :  { %v226_v32 = vpop.permute.xlu1 %225 }
 0x1e7   :  { %v3003_v33 = vadd.f32 %v226_v32, %v218_v31  ;;  %v58_v32 = vsub.s32 2, %v2965_v9 }
 0x1e9   :  { %2800 = vtanh.f32 %v3003_v33  ;;  %v59_v38 = vrot.slane %v2974_v11, %v58_v32 }
 0x1f3   :  { %v2801_v45 = vpop.eup %2800 }
 0x1f4   :  { %231 = vrot.lane.b32.xlu0 %v2801_v45, %s2897_s16 }
 0x1f8   :  { %54 = vbcast.lane.b32.xlu0 %v52_v48, 256 }
 0x266   :  { %v232_v49 = vpop.permute.xlu0 %231 }
 0x267   :  { %v234_v50 = vmul.f32 %v2799_v25, %v232_v49 }
 0x269   :  { %236 = vrot.lane.b32.xlu1 %v234_v50, %s2898_s17 }
 0x26a   :  { %v55_v53 = vpop.permute.xlu0 %54 }
 0x26b   :  { %v103_v54 = vmul.f32 %v2992_v14, %v55_v53 }
 0x26d   :  { %v115_v55 = vadd.f32 %v2998_v17, %v103_v54 }
 0x2db   :  { %v237_v51 = vpop.permute.xlu1 %236 }
 0x2dc   :  { %v239_v52 = vsel %vm132_vm1, %v237_v51, %v2960_v8  ;;  %2368 = vmatmul.mubr.msk.f32.vlgmr.msra.gmra.mrb[2].mxu0 %vm132_vm1, %v237_v51 }
 0x2dd   :  { %2357 = vmatmul.mubr.msk.f32.vlgmr.msra.gmra.mrb[0].mxu1 %vm244_vm2, %v239_v52  ;;  %2643 = vmatpush3.bf16.msra.mxu0 %v3015_v37 }
 0x2de   :  { %2644 = vmatprep.subr.bf16.mxu0 %v2893_v0  ;;  %2655 = vmatpush3.bf16.msra.mxu1 %v2952_v6 }
 0x2df   :  { %2656 = vmatprep.subr.bf16.mxu1 %v2893_v0  ;;  %2397 = vmatprep.mubr.msk.f32.mxu1 %vm2894_vm0, %v2895_v4 }
 0x2e0   :  { %2386 = vmatprep.mubr.msk.f32.mxu0 %vm2894_vm0, %v2895_v4 }
 0x2e1   :  { %2646 = vmatpush3.bf16.msra.mxu0 %v3021_v39 }
 0x2e2   :  { %2647 = vmatprep.subr.bf16.mxu0 %v2893_v0  ;;  %2658 = vmatpush3.bf16.msra.mxu1 %v2969_v10 }
 0x2e3   :  { %2659 = vmatprep.subr.bf16.mxu1 %v2893_v0 }
 0x2e5   :  { %2649 = vmatpush3.bf16.msra.mxu0 %v3031_v42 }
 0x2e6   :  { %2650 = vmatprep.subr.bf16.mxu0 %v2893_v0 }
 0x2e9   :  { %2652 = vmatpush3.bf16.msra.mxu0 %v3042_v46 }
 0x2ea   :  { %2671 = vmatprep.subr.bf16.mxu0 %v2893_v0 }
 0x3af   :  { %v416_v57 = vpop.f32.mrb[2].mxu0 }
 0x3b0   :  { %v420_v58 = vadd.f32 %v416_v57, %v115_v55  ;;  %v314_v59 = vpop.f32.mrb[0].mxu1  ;;  %v2369_v60 = vpop.f32.mrb[3].mxu0 }
 0x3b1   :  { %v315_v61 = vadd.f32 %v3075_v56, %v314_v59  ;;  %v2358_v62 = vpop.f32.mrb[1].mxu1 }
 0x3b2   :  { %v2146_v63 = vmul.f32 -1.442695, %v420_v58 }
 0x3b3   :  { %v2143_v1 = vmul.f32 -1.442695, %v315_v61 }
 0x3b4   :  { %2802 = vpow2.f32 %v2146_v63 }
 0x3b5   :  { %2804 = vpow2.f32 %v2143_v1 }
 0x3be   :  { %v2803_v2 = vpop.eup %2802 }
 0x3bf   :  { %v2805_v3 = vpop.eup %2804  ;;  %v424_v5 = vadd.f32 1.0, %v2803_v2 }
 0x3c0   :  { %v321_v7 = vadd.f32 1.0, %v2805_v3 }
 0x3c1   :  { %2806 = vrcp.f32 %v424_v5 }
 0x3c2   :  { %2808 = vrcp.f32 %v321_v7 }
 0x3cb   :  { %v2807_v12 = vpop.eup %2806 }
 0x3cc   :  { %v2809_v13 = vpop.eup %2808  ;;  %v427_v15 = vmul.f32 2.0, %v2807_v12  ;;  %v429_v25 = vmul.f32 %v2807_v12, %v3003_v33 }
 0x3cd   :  { %v324_v16 = vmul.f32 2.0, %v2809_v13 }
 0x3ce   :  { %v2147_v18 = vadd.f32 -1.0, %v427_v15 }
 0x3cf   :  { %v2144_v19 = vadd.f32 -1.0, %v324_v16 }
 0x3d0   :  { %431 = vrot.lane.b32.xlu0 %v2147_v18, %s2897_s16 }
 0x3d1   :  { %331 = vrot.lane.b32.xlu1 %v2144_v19, %s2897_s16 }
 0x3d5   :  { %326 = vrot.lane.b32.xlu1 %v2960_v8, %s2897_s16 }
 0x442   :  { %v432_v20 = vpop.permute.xlu0 %431 }
 0x443   :  { %v434_v21 = vmul.f32 %v2807_v12, %v432_v20  ;;  %v332_v22 = vpop.permute.xlu1 %331 }
 0x444   :  { %v334_v23 = vmul.f32 %v2809_v13, %v332_v22 }
 0x445   :  { %436 = vrot.lane.b32.xlu1 %v434_v21, %s2898_s17 }
 0x446   :  { %336 = vrot.lane.b32.xlu0 %v334_v23, %s2898_s17 }
 0x447   :  { %v327_v24 = vpop.permute.xlu1 %326 }
 0x448   :  { %v329_v26 = vmul.f32 %v2809_v13, %v327_v24  ;;  %v65_v24 = vsub.s32 3, %v2965_v9 }
 0x4b7   :  { %v437_v27 = vpop.permute.xlu1 %436 }
 0x4b8   :  { %v3085_v28 = vadd.f32 %v437_v27, %v429_v25  ;;  %v337_v29 = vpop.permute.xlu0 %336 }
 0x4b9   :  { %v3087_v30 = vadd.f32 %v337_v29, %v329_v26  ;;  %v66_v29 = vrot.slane %v2974_v11, %v65_v24 }
 0x4ba   :  { %2810 = vtanh.f32 %v3085_v28 }
 0x4bb   :  { %2812 = vtanh.f32 %v3087_v30 }
 0x4c4   :  { %v2811_v8 = vpop.eup %2810 }
 0x4c5   :  { %v2813_v31 = vpop.eup %2812  ;;  %442 = vrot.lane.b32.xlu1 %v2811_v8, %s2897_s16 }
 0x4c6   :  { %342 = vrot.lane.b32.xlu0 %v2813_v31, %s2897_s16 }
 0x537   :  { %v443_v33 = vpop.permute.xlu1 %442 }
 0x538   :  { %v445_v34 = vmul.f32 %v2807_v12, %v443_v33  ;;  %v343_v35 = vpop.permute.xlu0 %342 }
 0x539   :  { %v345_v36 = vmul.f32 %v2809_v13, %v343_v35 }
 0x53a   :  { %447 = vrot.lane.b32.xlu0 %v445_v34, %s2898_s17 }
 0x53b   :  { %451 = vrot.lane.b32.xlu1 %v345_v36, %s2897_s16 }
 0x53e   :  { %61 = vbcast.lane.b32.xlu0 %v59_v38, 256 }
 0x5ac   :  { %v448_v40 = vpop.permute.xlu0 %447 }
 0x5ad   :  { %v452_v41 = vpop.permute.xlu1 %451  ;;  %2398 = vmatmul.mubr.msk.f32.vlgmr.msra.gmra.mrb[2].mxu1 %vm132_vm1, %v448_v40 }
 0x5ae   :  { %v454_v43 = vsel %vm132_vm1, %v448_v40, %v452_v41  ;;  %2661 = vmatpush3.bf16.msra.mxu1 %v3015_v37  ;;  %2416 = vmatprep.mubr.msk.f32.mxu1 %vm2894_vm0, %v2895_v4 }
 0x5af   :  { %2387 = vmatmul.mubr.msk.f32.vlgmr.msra.gmra.mrb[4].mxu0 %vm244_vm2, %v454_v43  ;;  %2662 = vmatprep.subr.bf16.mxu1 %v2893_v0 }
 0x5b0   :  { %2673 = vmatpush3.bf16.msra.mxu0 %v2952_v6  ;;  %2427 = vmatprep.mubr.msk.f32.mxu0 %vm2894_vm0, %v2895_v4  ;;  %v62_v44 = vpop.permute.xlu0 %61 }
 0x5b1   :  { %2674 = vmatprep.subr.bf16.mxu0 %v2893_v0  ;;  %v104_v45 = vmul.f32 %v2992_v14, %v62_v44 }
 0x5b2   :  { %2664 = vmatpush3.bf16.msra.mxu1 %v3021_v39 }
 0x5b3   :  { %2665 = vmatprep.subr.bf16.mxu1 %v2893_v0  ;;  %v116_v47 = vadd.f32 %v2998_v17, %v104_v45 }
 0x5b4   :  { %2676 = vmatpush3.bf16.msra.mxu0 %v2969_v10 }
 0x5b5   :  { %2677 = vmatprep.subr.bf16.mxu0 %v2893_v0 }
 0x5b6   :  { %2667 = vmatpush3.bf16.msra.mxu1 %v3031_v42 }
 0x5b7   :  { %2668 = vmatprep.subr.bf16.mxu1 %v2893_v0 }
 0x5ba   :  { %2670 = vmatpush3.bf16.msra.mxu1 %v3042_v46 }
 0x5bb   :  { %2689 = vmatprep.subr.bf16.mxu1 %v2893_v0 }
 0x680   :  { %v623_v48 = vpop.f32.mrb[2].mxu1 }
 0x681   :  { %v627_v49 = vadd.f32 %v623_v48, %v116_v47  ;;  %v2399_v50 = vpop.f32.mrb[3].mxu1 }
 0x682   :  { %v524_v51 = vpop.f32.mrb[4].mxu0 }
 0x683   :  { %v2152_v52 = vmul.f32 -1.442695, %v627_v49  ;;  %v525_v53 = vadd.f32 %v3075_v56, %v524_v51  ;;  %v2388_v54 = vpop.f32.mrb[5].mxu0 }
 0x685   :  { %2814 = vpow2.f32 %v2152_v52  ;;  %v2149_v55 = vmul.f32 -1.442695, %v525_v53 }
 0x687   :  { %2816 = vpow2.f32 %v2149_v55 }
 0x68f   :  { %v2815_v57 = vpop.eup %2814 }
 0x690   :  { %v631_v58 = vadd.f32 1.0, %v2815_v57 }
 0x691   :  { %v2817_v59 = vpop.eup %2816 }
 0x692   :  { %2818 = vrcp.f32 %v631_v58  ;;  %v531_v60 = vadd.f32 1.0, %v2817_v59 }
 0x694   :  { %2820 = vrcp.f32 %v531_v60 }
 0x69c   :  { %v2819_v61 = vpop.eup %2818 }
 0x69d   :  { %v634_v62 = vmul.f32 2.0, %v2819_v61  ;;  %v636_v15 = vmul.f32 %v2819_v61, %v3085_v28 }
 0x69e   :  { %v2821_v63 = vpop.eup %2820 }
 0x69f   :  { %v2153_v1 = vadd.f32 -1.0, %v634_v62  ;;  %v534_v2 = vmul.f32 2.0, %v2821_v63  ;;  %v536_v19 = vmul.f32 %v2821_v63, %v3087_v30 }
 0x6a1   :  { %638 = vrot.lane.b32.xlu0 %v2153_v1, %s2897_s16  ;;  %v2150_v3 = vadd.f32 -1.0, %v534_v2 }
 0x6a3   :  { %538 = vrot.lane.b32.xlu1 %v2150_v3, %s2897_s16 }
 0x713   :  { %v639_v5 = vpop.permute.xlu0 %638 }
 0x714   :  { %v641_v7 = vmul.f32 %v2819_v61, %v639_v5 }
 0x715   :  { %v539_v12 = vpop.permute.xlu1 %538 }
 0x716   :  { %v541_v13 = vmul.f32 %v2821_v63, %v539_v12  ;;  %643 = vrot.lane.b32.xlu0 %v641_v7, %s2898_s17 }
 0x718   :  { %543 = vrot.lane.b32.xlu1 %v541_v13, %s2898_s17  ;;  %v72_v13 = vsub.s32 4, %v2965_v9 }
 0x788   :  { %v644_v16 = vpop.permute.xlu0 %643 }
 0x789   :  { %v3124_v18 = vadd.f32 %v644_v16, %v636_v15 }
 0x78a   :  { %v544_v20 = vpop.permute.xlu1 %543 }
 0x78b   :  { %2822 = vtanh.f32 %v3124_v18  ;;  %v3128_v21 = vadd.f32 %v544_v20, %v536_v19  ;;  %v73_v19 = vrot.slane %v2974_v11, %v72_v13 }
 0x78d   :  { %2824 = vtanh.f32 %v3128_v21 }
 0x795   :  { %v2823_v22 = vpop.eup %2822 }
 0x796   :  { %649 = vrot.lane.b32.xlu0 %v2823_v22, %s2897_s16 }
 0x797   :  { %v2825_v23 = vpop.eup %2824 }
 0x798   :  { %549 = vrot.lane.b32.xlu1 %v2825_v23, %s2897_s16 }
 0x808   :  { %v650_v25 = vpop.permute.xlu0 %649 }
 0x809   :  { %v652_v26 = vmul.f32 %v2819_v61, %v650_v25 }
 0x80a   :  { %v550_v27 = vpop.permute.xlu1 %549 }
 0x80b   :  { %v552_v28 = vmul.f32 %v2821_v63, %v550_v27  ;;  %654 = vrot.lane.b32.xlu1 %v652_v26, %s2898_s17 }
 0x80d   :  { %658 = vrot.lane.b32.xlu0 %v552_v28, %s2897_s16 }
 0x80f   :  { %68 = vbcast.lane.b32.xlu1 %v66_v29, 256 }
 0x87d   :  { %v655_v30 = vpop.permute.xlu1 %654 }
 0x87e   :  { %2428 = vmatmul.mubr.msk.f32.vlgmr.msra.gmra.mrb[6].mxu0 %vm132_vm1, %v655_v30 }
 0x87f   :  { %v659_v8 = vpop.permute.xlu0 %658  ;;  %2679 = vmatpush3.bf16.msra.mxu0 %v3015_v37  ;;  %2446 = vmatprep.mubr.msk.f32.mxu0 %vm2894_vm0, %v2895_v4 }
 0x880   :  { %v661_v31 = vsel %vm132_vm1, %v655_v30, %v659_v8  ;;  %2680 = vmatprep.subr.bf16.mxu0 %v2893_v0 }
 0x881   :  { %2417 = vmatmul.mubr.msk.f32.vlgmr.msra.gmra.mrb[4].mxu1 %vm244_vm2, %v661_v31  ;;  %v69_v32 = vpop.permute.xlu1 %68 }
 0x882   :  { %2691 = vmatpush3.bf16.msra.mxu1 %v2952_v6  ;;  %2457 = vmatprep.mubr.msk.f32.mxu1 %vm2894_vm0, %v2895_v4  ;;  %v105_v33 = vmul.f32 %v2992_v14, %v69_v32 }
 0x883   :  { %2682 = vmatpush3.bf16.msra.mxu0 %v3021_v39  ;;  %2692 = vmatprep.subr.bf16.mxu1 %v2893_v0 }
 0x884   :  { %2683 = vmatprep.subr.bf16.mxu0 %v2893_v0  ;;  %v117_v34 = vadd.f32 %v2998_v17, %v105_v33 }
 0x886   :  { %2694 = vmatpush3.bf16.msra.mxu1 %v2969_v10 }
 0x887   :  { %2685 = vmatpush3.bf16.msra.mxu0 %v3031_v42  ;;  %2695 = vmatprep.subr.bf16.mxu1 %v2893_v0 }
 0x888   :  { %2686 = vmatprep.subr.bf16.mxu0 %v2893_v0 }
 0x88b   :  { %2688 = vmatpush3.bf16.msra.mxu0 %v3042_v46 }
 0x88c   :  { %2707 = vmatprep.subr.bf16.mxu0 %v2893_v0 }
 0x951   :  { %v830_v35 = vpop.f32.mrb[6].mxu0 }
 0x952   :  { %v834_v36 = vadd.f32 %v830_v35, %v117_v34  ;;  %v2429_v38 = vpop.f32.mrb[7].mxu0 }
 0x954   :  { %v2158_v40 = vmul.f32 -1.442695, %v834_v36  ;;  %v731_v41 = vpop.f32.mrb[4].mxu1 }
 0x955   :  { %v732_v43 = vadd.f32 %v3075_v56, %v731_v41  ;;  %v2418_v44 = vpop.f32.mrb[5].mxu1 }
 0x956   :  { %2826 = vpow2.f32 %v2158_v40 }
 0x957   :  { %v2155_v45 = vmul.f32 -1.442695, %v732_v43 }
 0x959   :  { %2828 = vpow2.f32 %v2155_v45 }
 0x960   :  { %v2827_v47 = vpop.eup %2826 }
 0x961   :  { %v838_v48 = vadd.f32 1.0, %v2827_v47 }
 0x963   :  { %v2829_v49 = vpop.eup %2828  ;;  %2830 = vrcp.f32 %v838_v48 }
 0x964   :  { %v738_v50 = vadd.f32 1.0, %v2829_v49 }
 0x966   :  { %2832 = vrcp.f32 %v738_v50 }
 0x96d   :  { %v2831_v51 = vpop.eup %2830 }
 0x96e   :  { %v841_v52 = vmul.f32 2.0, %v2831_v51  ;;  %v843_v62 = vmul.f32 %v2831_v51, %v3124_v18 }
 0x970   :  { %v2833_v53 = vpop.eup %2832  ;;  %v2159_v54 = vadd.f32 -1.0, %v841_v52 }
 0x971   :  { %v741_v55 = vmul.f32 2.0, %v2833_v53  ;;  %v743_v2 = vmul.f32 %v2833_v53, %v3128_v21 }
 0x972   :  { %845 = vrot.lane.b32.xlu1 %v2159_v54, %s2897_s16 }
 0x973   :  { %v2156_v57 = vadd.f32 -1.0, %v741_v55 }
 0x975   :  { %745 = vrot.lane.b32.xlu0 %v2156_v57, %s2897_s16 }
 0x9e4   :  { %v846_v58 = vpop.permute.xlu1 %845 }
 0x9e5   :  { %v848_v59 = vmul.f32 %v2831_v51, %v846_v58 }
 0x9e7   :  { %850 = vrot.lane.b32.xlu1 %v848_v59, %s2898_s17  ;;  %v746_v60 = vpop.permute.xlu0 %745 }
 0x9e8   :  { %v748_v61 = vmul.f32 %v2833_v53, %v746_v60 }
 0x9ea   :  { %750 = vrot.lane.b32.xlu0 %v748_v61, %s2898_s17  ;;  %v79_v61 = vsub.s32 5, %v2965_v9 }
 0xa59   :  { %v851_v63 = vpop.permute.xlu1 %850 }
 0xa5a   :  { %v3164_v1 = vadd.f32 %v851_v63, %v843_v62 }
 0xa5c   :  { %2834 = vtanh.f32 %v3164_v1  ;;  %v751_v3 = vpop.permute.xlu0 %750 }
 0xa5d   :  { %v3168_v5 = vadd.f32 %v751_v3, %v743_v2 }
 0xa5f   :  { %2836 = vtanh.f32 %v3168_v5 }
 0xa66   :  { %v2835_v7 = vpop.eup %2834 }
 0xa67   :  { %856 = vrot.lane.b32.xlu1 %v2835_v7, %s2897_s16 }
 0xa69   :  { %v2837_v12 = vpop.eup %2836 }
 0xa6a   :  { %756 = vrot.lane.b32.xlu0 %v2837_v12, %s2897_s16 }
 0xad9   :  { %v857_v15 = vpop.permute.xlu1 %856 }
 0xada   :  { %v859_v16 = vmul.f32 %v2831_v51, %v857_v15 }
 0xadc   :  { %861 = vrot.lane.b32.xlu0 %v859_v16, %s2898_s17  ;;  %v757_v18 = vpop.permute.xlu0 %756 }
 0xadd   :  { %v759_v20 = vmul.f32 %v2833_v53, %v757_v18 }
 0xadf   :  { %865 = vrot.lane.b32.xlu1 %v759_v20, %s2897_s16 }
 0xae0   :  { %75 = vbcast.lane.b32.xlu0 %v73_v19, 256 }
 0xb4e   :  { %v862_v21 = vpop.permute.xlu0 %861 }
 0xb4f   :  { %2458 = vmatmul.mubr.msk.f32.vlgmr.msra.gmra.mrb[6].mxu1 %vm132_vm1, %v862_v21 }
 0xb50   :  { %2697 = vmatpush3.bf16.msra.mxu1 %v3015_v37  ;;  %2476 = vmatprep.mubr.msk.f32.mxu1 %vm2894_vm0, %v2895_v4 }
 0xb51   :  { %v866_v22 = vpop.permute.xlu1 %865  ;;  %2698 = vmatprep.subr.bf16.mxu1 %v2893_v0 }
 0xb52   :  { %v868_v23 = vsel %vm132_vm1, %v862_v21, %v866_v22  ;;  %v76_v24 = vpop.permute.xlu0 %75 }
 0xb53   :  { %2447 = vmatmul.mubr.msk.f32.vlgmr.msra.gmra.mrb[8].mxu0 %vm244_vm2, %v868_v23  ;;  %v106_v25 = vmul.f32 %v2992_v14, %v76_v24 }
 0xb54   :  { %2709 = vmatpush3.bf16.msra.mxu0 %v2952_v6  ;;  %2700 = vmatpush3.bf16.msra.mxu1 %v3021_v39 }
 0xb55   :  { %2710 = vmatprep.subr.bf16.mxu0 %v2893_v0  ;;  %2701 = vmatprep.subr.bf16.mxu1 %v2893_v0  ;;  %v118_v26 = vadd.f32 %v2998_v17, %v106_v25 }
 0xb56   :  { %2487 = vmatprep.mubr.msk.f32.mxu0 %vm2894_vm0, %v2895_v4 }
 0xb58   :  { %2712 = vmatpush3.bf16.msra.mxu0 %v2969_v10  ;;  %2703 = vmatpush3.bf16.msra.mxu1 %v3031_v42 }
 0xb59   :  { %2704 = vmatprep.subr.bf16.mxu1 %v2893_v0  ;;  %2713 = vmatprep.subr.bf16.mxu0 %v2893_v0 }
 0xb5c   :  { %2706 = vmatpush3.bf16.msra.mxu1 %v3042_v46 }
 0xb5d   :  { %2725 = vmatprep.subr.bf16.mxu1 %v2893_v0 }
 0xc22   :  { %v1037_v27 = vpop.f32.mrb[6].mxu1 }
 0xc23   :  { %v1041_v28 = vadd.f32 %v1037_v27, %v118_v26  ;;  %v2459_v29 = vpop.f32.mrb[7].mxu1 }
 0xc25   :  { %v2164_v30 = vmul.f32 -1.442695, %v1041_v28 }
 0xc26   :  { %v938_v8 = vpop.f32.mrb[8].mxu0 }
 0xc27   :  { %2838 = vpow2.f32 %v2164_v30  ;;  %v939_v31 = vadd.f32 %v3075_v56, %v938_v8  ;;  %v2448_v32 = vpop.f32.mrb[9].mxu0 }
 0xc29   :  { %v2161_v33 = vmul.f32 -1.442695, %v939_v31 }
 0xc2b   :  { %2840 = vpow2.f32 %v2161_v33 }
 0xc31   :  { %v2839_v34 = vpop.eup %2838 }
 0xc32   :  { %v1045_v35 = vadd.f32 1.0, %v2839_v34 }
 0xc34   :  { %2842 = vrcp.f32 %v1045_v35 }
 0xc35   :  { %v2841_v36 = vpop.eup %2840 }
 0xc36   :  { %v945_v38 = vadd.f32 1.0, %v2841_v36 }
 0xc38   :  { %2844 = vrcp.f32 %v945_v38 }
 0xc3e   :  { %v2843_v40 = vpop.eup %2842 }
 0xc3f   :  { %v1048_v41 = vmul.f32 2.0, %v2843_v40  ;;  %v1050_v52 = vmul.f32 %v2843_v40, %v3164_v1  ;;  %v80_v1 = vrot.slane %v2974_v11, %v79_v61 }
 0xc41   :  { %v2165_v43 = vadd.f32 -1.0, %v1048_v41 }
 0xc42   :  { %v2845_v44 = vpop.eup %2844 }
 0xc43   :  { %1052 = vrot.lane.b32.xlu0 %v2165_v43, %s2897_s16  ;;  %v948_v45 = vmul.f32 2.0, %v2845_v44  ;;  %v950_v55 = vmul.f32 %v2845_v44, %v3168_v5 }
 0xc45   :  { %v2162_v47 = vadd.f32 -1.0, %v948_v45 }
 0xc47   :  { %952 = vrot.lane.b32.xlu1 %v2162_v47, %s2897_s16 }
 0xcb5   :  { %v1053_v48 = vpop.permute.xlu0 %1052 }
 0xcb6   :  { %v1055_v49 = vmul.f32 %v2843_v40, %v1053_v48 }
 0xcb8   :  { %1057 = vrot.lane.b32.xlu0 %v1055_v49, %s2898_s17 }
 0xcb9   :  { %v953_v50 = vpop.permute.xlu1 %952 }
 0xcba   :  { %v955_v51 = vmul.f32 %v2845_v44, %v953_v50 }
 0xcbc   :  { %957 = vrot.lane.b32.xlu1 %v955_v51, %s2898_s17  ;;  %v86_v51 = vsub.s32 6, %v2965_v9 }
 0xd2a   :  { %v1058_v53 = vpop.permute.xlu0 %1057 }
 0xd2b   :  { %v3204_v54 = vadd.f32 %v1058_v53, %v1050_v52 }
 0xd2d   :  { %2846 = vtanh.f32 %v3204_v54 }
 0xd2e   :  { %v958_v57 = vpop.permute.xlu1 %957 }
 0xd2f   :  { %v3208_v58 = vadd.f32 %v958_v57, %v950_v55 }
 0xd31   :  { %2848 = vtanh.f32 %v3208_v58 }
 0xd37   :  { %v2847_v59 = vpop.eup %2846 }
 0xd38   :  { %1063 = vrot.lane.b32.xlu0 %v2847_v59, %s2897_s16 }
 0xd3b   :  { %v2849_v60 = vpop.eup %2848 }
 0xd3c   :  { %963 = vrot.lane.b32.xlu1 %v2849_v60, %s2897_s16 }
 0xdaa   :  { %v1064_v62 = vpop.permute.xlu0 %1063 }
 0xdab   :  { %v1066_v63 = vmul.f32 %v2843_v40, %v1064_v62 }
 0xdad   :  { %1068 = vrot.lane.b32.xlu1 %v1066_v63, %s2898_s17 }
 0xdae   :  { %v964_v2 = vpop.permute.xlu1 %963 }
 0xdaf   :  { %v966_v3 = vmul.f32 %v2845_v44, %v964_v2 }
 0xdb1   :  { %1072 = vrot.lane.b32.xlu0 %v966_v3, %s2897_s16  ;;  %82 = vbcast.lane.b32.xlu1 %v80_v1, 256 }
 0xe1f   :  { %v1069_v5 = vpop.permute.xlu1 %1068 }
 0xe20   :  { %2488 = vmatmul.mubr.msk.f32.vlgmr.msra.gmra.mrb[10].mxu0 %vm132_vm1, %v1069_v5 }
 0xe21   :  { %2715 = vmatpush3.bf16.msra.mxu0 %v3015_v37  ;;  %2506 = vmatprep.mubr.msk.f32.mxu0 %vm2894_vm0, %v2895_v4 }
 0xe22   :  { %2716 = vmatprep.subr.bf16.mxu0 %v2893_v0 }
 0xe23   :  { %v1073_v7 = vpop.permute.xlu0 %1072  ;;  %v83_v13 = vpop.permute.xlu1 %82 }
 0xe24   :  { %v1075_v12 = vsel %vm132_vm1, %v1069_v5, %v1073_v7  ;;  %v107_v15 = vmul.f32 %v2992_v14, %v83_v13 }
 0xe25   :  { %2477 = vmatmul.mubr.msk.f32.vlgmr.msra.gmra.mrb[8].mxu1 %vm244_vm2, %v1075_v12  ;;  %2718 = vmatpush3.bf16.msra.mxu0 %v3021_v39 }
 0xe26   :  { %2727 = vmatpush3.bf16.msra.mxu1 %v2952_v6  ;;  %2719 = vmatprep.subr.bf16.mxu0 %v2893_v0  ;;  %v119_v16 = vadd.f32 %v2998_v17, %v107_v15 }
 0xe27   :  { %2728 = vmatprep.subr.bf16.mxu1 %v2893_v0  ;;  %2517 = vmatprep.mubr.msk.f32.mxu1 %vm2894_vm0, %v2895_v4 }
 0xe29   :  { %2721 = vmatpush3.bf16.msra.mxu0 %v3031_v42 }
 0xe2a   :  { %2730 = vmatpush3.bf16.msra.mxu1 %v2969_v10  ;;  %2722 = vmatprep.subr.bf16.mxu0 %v2893_v0 }
 0xe2b   :  { %2731 = vmatprep.subr.bf16.mxu1 %v2893_v0 }
 0xe2d   :  { %2724 = vmatpush3.bf16.msra.mxu0 %v3042_v46 }
 0xe2e   :  { %2743 = vmatprep.subr.bf16.mxu0 %v2893_v0 }
 0xef3   :  { %v1244_v18 = vpop.f32.mrb[10].mxu0 }
 0xef4   :  { %v1248_v19 = vadd.f32 %v1244_v18, %v119_v16  ;;  %v2489_v20 = vpop.f32.mrb[11].mxu0 }
 0xef6   :  { %v2170_v21 = vmul.f32 -1.442695, %v1248_v19 }
 0xef8   :  { %2850 = vpow2.f32 %v2170_v21  ;;  %v1145_v22 = vpop.f32.mrb[8].mxu1 }
 0xef9   :  { %v1146_v23 = vadd.f32 %v3075_v56, %v1145_v22  ;;  %v2478_v24 = vpop.f32.mrb[9].mxu1 }
 0xefb   :  { %v2167_v25 = vmul.f32 -1.442695, %v1146_v23 }
 0xefd   :  { %2852 = vpow2.f32 %v2167_v25 }
 0xf02   :  { %v2851_v26 = vpop.eup %2850 }
 0xf03   :  { %v1252_v27 = vadd.f32 1.0, %v2851_v26 }
 0xf05   :  { %2854 = vrcp.f32 %v1252_v27 }
 0xf07   :  { %v2853_v28 = vpop.eup %2852 }
 0xf08   :  { %v1152_v29 = vadd.f32 1.0, %v2853_v28 }
 0xf0a   :  { %2856 = vrcp.f32 %v1152_v29 }
 0xf0f   :  { %v2855_v30 = vpop.eup %2854 }
 0xf10   :  { %v1255_v8 = vmul.f32 2.0, %v2855_v30  ;;  %v1257_v41 = vmul.f32 %v2855_v30, %v3204_v54  ;;  %v87_v54 = vrot.slane %v2974_v11, %v86_v51 }
 0xf12   :  { %v2171_v31 = vadd.f32 -1.0, %v1255_v8 }
 0xf14   :  { %v2857_v32 = vpop.eup %2856  ;;  %1259 = vrot.lane.b32.xlu1 %v2171_v31, %s2897_s16 }
 0xf15   :  { %v1155_v33 = vmul.f32 2.0, %v2857_v32  ;;  %v1157_v45 = vmul.f32 %v2857_v32, %v3208_v58 }
 0xf17   :  { %v2168_v34 = vadd.f32 -1.0, %v1155_v33 }
 0xf19   :  { %1159 = vrot.lane.b32.xlu0 %v2168_v34, %s2897_s16 }
 0xf86   :  { %v1260_v35 = vpop.permute.xlu1 %1259 }
 0xf87   :  { %v1262_v36 = vmul.f32 %v2855_v30, %v1260_v35  ;;  %v93_v35 = vsub.s32 7, %v2965_v9 }
 0xf89   :  { %1264 = vrot.lane.b32.xlu1 %v1262_v36, %s2898_s17 }
 0xf8b   :  { %v1160_v38 = vpop.permute.xlu0 %1159 }
 0xf8c   :  { %v1162_v40 = vmul.f32 %v2857_v32, %v1160_v38 }
 0xf8e   :  { %1164 = vrot.lane.b32.xlu0 %v1162_v40, %s2898_s17  ;;  %v94_v40 = vrot.slane %v2974_v11, %v93_v35 }
 0xffb   :  { %v1265_v43 = vpop.permute.xlu1 %1264 }
 0xffc   :  { %v3244_v44 = vadd.f32 %v1265_v43, %v1257_v41 }
 0xffe   :  { %2858 = vtanh.f32 %v3244_v44 }
0x1000   :  { %v1165_v47 = vpop.permute.xlu0 %1164 }
0x1001   :  { %v3248_v48 = vadd.f32 %v1165_v47, %v1157_v45 }
0x1003   :  { %2860 = vtanh.f32 %v3248_v48 }
0x1008   :  { %v2859_v49 = vpop.eup %2858 }
0x1009   :  { %1270 = vrot.lane.b32.xlu1 %v2859_v49, %s2897_s16 }
0x100d   :  { %v2861_v50 = vpop.eup %2860 }
0x100e   :  { %1170 = vrot.lane.b32.xlu0 %v2861_v50, %s2897_s16 }
0x107b   :  { %v1271_v52 = vpop.permute.xlu1 %1270 }
0x107c   :  { %v1273_v53 = vmul.f32 %v2855_v30, %v1271_v52 }
0x107e   :  { %1275 = vrot.lane.b32.xlu0 %v1273_v53, %s2898_s17 }
0x1080   :  { %v1171_v55 = vpop.permute.xlu0 %1170 }
0x1081   :  { %v1173_v57 = vmul.f32 %v2857_v32, %v1171_v55 }
0x1082   :  { %89 = vbcast.lane.b32.xlu0 %v87_v54, 256 }
0x1083   :  { %1279 = vrot.lane.b32.xlu1 %v1173_v57, %s2897_s16 }
0x10f0   :  { %v1276_v58 = vpop.permute.xlu0 %1275 }
0x10f1   :  { %2518 = vmatmul.mubr.msk.f32.vlgmr.msra.gmra.mrb[10].mxu1 %vm132_vm1, %v1276_v58 }
0x10f2   :  { %2733 = vmatpush3.bf16.msra.mxu1 %v3015_v37  ;;  %2536 = vmatprep.mubr.msk.f32.mxu1 %vm2894_vm0, %v2895_v4 }
0x10f3   :  { %2734 = vmatprep.subr.bf16.mxu1 %v2893_v0 }
0x10f4   :  { %v90_v61 = vpop.permute.xlu0 %89 }
0x10f5   :  { %v1280_v59 = vpop.permute.xlu1 %1279 }
0x10f6   :  { %v1282_v60 = vsel %vm132_vm1, %v1276_v58, %v1280_v59  ;;  %2736 = vmatpush3.bf16.msra.mxu1 %v3021_v39 }
0x10f7   :  { %2507 = vmatmul.mubr.msk.f32.vlgmr.msra.gmra.mrb[12].mxu0 %vm244_vm2, %v1282_v60  ;;  %2737 = vmatprep.subr.bf16.mxu1 %v2893_v0 }
0x10f8   :  { %2745 = vmatpush3.bf16.msra.mxu0 %v2952_v6  ;;  %2547 = vmatprep.mubr.msk.f32.mxu0 %vm2894_vm0, %v2895_v4  ;;  %v108_v6 = vmul.f32 %v2992_v14, %v90_v61 }
0x10f9   :  { %2746 = vmatprep.subr.bf16.mxu0 %v2893_v0 }
0x10fa   :  { %2739 = vmatpush3.bf16.msra.mxu1 %v3031_v42  ;;  %v120_v62 = vadd.f32 %v2998_v17, %v108_v6 }
0x10fb   :  { %2740 = vmatprep.subr.bf16.mxu1 %v2893_v0 }
0x10fc   :  { %2748 = vmatpush3.bf16.msra.mxu0 %v2969_v10 }
0x10fd   :  { %2749 = vmatprep.subr.bf16.mxu0 %v2893_v0 }
0x10fe   :  { %2742 = vmatpush3.bf16.msra.mxu1 %v3042_v46 }
0x10ff   :  { %2761 = vmatprep.subr.bf16.mxu1 %v2893_v0 }
0x11c4   :  { %v1451_v63 = vpop.f32.mrb[10].mxu1 }
0x11c5   :  { %v1455_v1 = vadd.f32 %v1451_v63, %v120_v62  ;;  %v2519_v2 = vpop.f32.mrb[11].mxu1 }
0x11c7   :  { %v2176_v3 = vmul.f32 -1.442695, %v1455_v1 }
0x11c9   :  { %2862 = vpow2.f32 %v2176_v3 }
0x11ca   :  { %v1352_v5 = vpop.f32.mrb[12].mxu0 }
0x11cb   :  { %v1353_v7 = vadd.f32 %v3075_v56, %v1352_v5  ;;  %v2508_v10 = vpop.f32.mrb[13].mxu0 }
0x11cd   :  { %v2173_v12 = vmul.f32 -1.442695, %v1353_v7 }
0x11cf   :  { %2864 = vpow2.f32 %v2173_v12 }
0x11d3   :  { %v2863_v13 = vpop.eup %2862 }
0x11d4   :  { %v1459_v15 = vadd.f32 1.0, %v2863_v13 }
0x11d6   :  { %2866 = vrcp.f32 %v1459_v15 }
0x11d9   :  { %v2865_v16 = vpop.eup %2864 }
0x11da   :  { %v1359_v18 = vadd.f32 1.0, %v2865_v16 }
0x11dc   :  { %2868 = vrcp.f32 %v1359_v18 }
0x11e0   :  { %v2867_v14 = vpop.eup %2866 }
0x11e1   :  { %v1462_v19 = vmul.f32 2.0, %v2867_v14  ;;  %v1464_v28 = vmul.f32 %v2867_v14, %v3244_v44 }
0x11e3   :  { %v2177_v20 = vadd.f32 -1.0, %v1462_v19 }
0x11e5   :  { %1466 = vrot.lane.b32.xlu0 %v2177_v20, %s2897_s16 }
0x11e6   :  { %v2869_v21 = vpop.eup %2868 }
0x11e7   :  { %v1362_v22 = vmul.f32 2.0, %v2869_v21  ;;  %v1364_v8 = vmul.f32 %v2869_v21, %v3248_v48 }
0x11e9   :  { %v2174_v23 = vadd.f32 -1.0, %v1362_v22 }
0x11eb   :  { %1366 = vrot.lane.b32.xlu1 %v2174_v23, %s2897_s16 }
0x1257   :  { %v1467_v24 = vpop.permute.xlu0 %1466 }
0x1258   :  { %v1469_v25 = vmul.f32 %v2867_v14, %v1467_v24 }
0x125a   :  { %1471 = vrot.lane.b32.xlu0 %v1469_v25, %s2898_s17 }
0x125d   :  { %v1367_v26 = vpop.permute.xlu1 %1366 }
0x125e   :  { %v1369_v27 = vmul.f32 %v2869_v21, %v1367_v26 }
0x1260   :  { %1371 = vrot.lane.b32.xlu1 %v1369_v27, %s2898_s17 }
0x12cc   :  { %v1472_v29 = vpop.permute.xlu0 %1471 }
0x12cd   :  { %v3284_v30 = vadd.f32 %v1472_v29, %v1464_v28 }
0x12cf   :  { %2870 = vtanh.f32 %v3284_v30 }
0x12d2   :  { %v1372_v31 = vpop.permute.xlu1 %1371 }
0x12d3   :  { %v3288_v32 = vadd.f32 %v1372_v31, %v1364_v8 }
0x12d5   :  { %2872 = vtanh.f32 %v3288_v32 }
0x12d9   :  { %v2871_v33 = vpop.eup %2870 }
0x12da   :  { %1477 = vrot.lane.b32.xlu0 %v2871_v33, %s2897_s16 }
0x12df   :  { %v2873_v34 = vpop.eup %2872 }
0x12e0   :  { %1377 = vrot.lane.b32.xlu1 %v2873_v34, %s2897_s16 }
0x134c   :  { %v1478_v36 = vpop.permute.xlu0 %1477 }
0x134d   :  { %v1480_v38 = vmul.f32 %v2867_v14, %v1478_v36 }
0x134f   :  { %1482 = vrot.lane.b32.xlu1 %v1480_v38, %s2898_s17 }
0x1352   :  { %v1378_v41 = vpop.permute.xlu1 %1377 }
0x1353   :  { %v1380_v43 = vmul.f32 %v2869_v21, %v1378_v41  ;;  %96 = vbcast.lane.b32.xlu1 %v94_v40, 256  ;;  %v1798_v40 = vld [vmem:[%s3423_s5 + $0x18] sm:$0xff]  ;;  %v1799_v41 = vld [vmem:[%s3423_s5 + $0x20] sm:$0xff] }
0x1355   :  { %1486 = vrot.lane.b32.xlu0 %v1380_v43, %s2897_s16 }
0x13c1   :  { %v1483_v44 = vpop.permute.xlu1 %1482 }
0x13c2   :  { %2548 = vmatmul.mubr.msk.f32.vlgmr.msra.gmra.mrb[14].mxu0 %vm132_vm1, %v1483_v44 }
0x13c3   :  { %2751 = vmatpush3.bf16.msra.mxu0 %v3015_v37  ;;  %2566 = vmatprep.mubr.msk.f32.mxu0 %vm2894_vm0, %v2895_v4 }
0x13c4   :  { %2752 = vmatprep.subr.bf16.mxu0 %v2893_v0 }
0x13c5   :  { %v97_v37 = vpop.permute.xlu1 %96 }
0x13c7   :  { %v1487_v9 = vpop.permute.xlu0 %1486  ;;  %2754 = vmatpush3.bf16.msra.mxu0 %v3021_v39  ;;  %v2892_v39 = vld [vmem:[%s3422_s3] ss:$0 sm:$0xff] }
0x13c8   :  { %v1489_v11 = vsel %vm132_vm1, %v1483_v44, %v1487_v9  ;;  %2755 = vmatprep.subr.bf16.mxu0 %v2893_v0  ;;  %v109_v45 = vmul.f32 %v2892_v39, %v97_v37  ;;  %v1800_v44 = vld [vmem:[%s3423_s5 + $0x28] sm:$0xff] }
0x13c9   :  { %2537 = vmatmul.mubr.msk.f32.vlgmr.msra.gmra.mrb[12].mxu1 %vm244_vm2, %v1489_v11  ;;  %v2765_v9 = vpack.c.bf16 %v1800_v44, %v1799_v41 }
0x13ca   :  { %2577 = vmatprep.mubr.msk.f32.mxu1 %vm2894_vm0, %v2895_v4  ;;  %v121_v47 = vadd.f32 %v2998_v17, %v109_v45  ;;  %v1795_v45 = vld [vmem:[%s3423_s5] sm:$0xff] }
0x13cb   :  { %2757 = vmatpush3.bf16.msra.mxu0 %v3031_v42 }
0x13cc   :  { %2758 = vmatprep.subr.bf16.mxu0 %v2893_v0 }
0x13cf   :  { %2760 = vmatpush3.bf16.msra.mxu0 %v3042_v46 }
0x13d0   :  { %2783 = vmatprep.subr.bf16.mxu0 %v2893_v0 }
0x1495   :  { %v1658_v48 = vpop.f32.mrb[14].mxu0 }
0x1496   :  { %v1662_v49 = vadd.f32 %v1658_v48, %v121_v47  ;;  %v2549_v50 = vpop.f32.mrb[15].mxu0  ;;  %v1796_v47 = vld [vmem:[%s3423_s5 + $0x8] sm:$0x7] }
0x1497   :  { %v2768_v48 = vpack.c.bf16 %v1796_v47, %v1795_v45  ;;  %v1969_v50 = vld [vmem:[%s3424_s6 + $0x8] sm:$0xff] }
0x1498   :  { %v2182_v51 = vmul.f32 -1.442695, %v1662_v49  ;;  %v1968_v49 = vld [vmem:[%s3424_s6] sm:$0xff] }
0x149a   :  { %2874 = vpow2.f32 %v2182_v51 }
0x149c   :  { %v1559_v42 = vpop.f32.mrb[12].mxu1 }
0x149d   :  { %v1560_v52 = vadd.f32 %v3075_v56, %v1559_v42  ;;  %v2538_v53 = vpop.f32.mrb[13].mxu1  ;;  %v1808_v42 = vld [vmem:[%s3425_s2] sm:$0xff] }
0x149e   :  { %v1970_v53 = vld [vmem:[%s3424_s6 + $0x10] sm:$0xff] }
0x149f   :  { %v2179_v46 = vmul.f32 -1.442695, %v1560_v52  ;;  %v2772_v52 = vpack.c.bf16 %v1969_v50, %v1968_v49 }
0x14a1   :  { %2876 = vpow2.f32 %v2179_v46  ;;  %v1971_v46 = vld [vmem:[%s3424_s6 + $0x18] sm:$0xff] }
0x14a4   :  { %v2875_v54 = vpop.eup %2874 }
0x14a5   :  { %v1666_v55 = vadd.f32 1.0, %v2875_v54  ;;  %v2775_v54 = vpack.c.bf16 %v1971_v46, %v1970_v53 }
0x14a7   :  { %2878 = vrcp.f32 %v1666_v55  ;;  %v1972_v55 = vld [vmem:[%s3424_s6 + $0x20] sm:$0xff] }
0x14ab   :  { %v2877_v57 = vpop.eup %2876 }
0x14ac   :  { %v1566_v58 = vadd.f32 1.0, %v2877_v57 }
0x14ae   :  { %2880 = vrcp.f32 %v1566_v58  ;;  %v1974_v58 = vld [vmem:[%s3424_s6 + $0x30] sm:$0xff] }
0x14b1   :  { %v2879_v59 = vpop.eup %2878 }
0x14b2   :  { %v1669_v60 = vmul.f32 2.0, %v2879_v59  ;;  %v1671_v5 = vmul.f32 %v2879_v59, %v3284_v30 }
0x14b4   :  { %v2183_v17 = vadd.f32 -1.0, %v1669_v60 }
0x14b6   :  { %1673 = vrot.lane.b32.xlu1 %v2183_v17, %s2897_s16  ;;  %v1801_v17 = vld [vmem:[%s3419_s4 + $0x60] sm:$0xff] }
0x14b8   :  { %v2881_v61 = vpop.eup %2880 }
0x14b9   :  { %v1569_v6 = vmul.f32 2.0, %v2881_v61  ;;  %v1571_v12 = vmul.f32 %v2881_v61, %v3288_v32 }
0x14bb   :  { %v2180_v62 = vadd.f32 -1.0, %v1569_v6 }
0x14bd   :  { %1573 = vrot.lane.b32.xlu0 %v2180_v62, %s2897_s16 }
0x1528   :  { %v1674_v63 = vpop.permute.xlu1 %1673 }
0x1529   :  { %v1676_v1 = vmul.f32 %v2879_v59, %v1674_v63 }
0x152b   :  { %1678 = vrot.lane.b32.xlu1 %v1676_v1, %s2898_s17  ;;  %v2190_v1 = vld [vmem:[%s3422_s3 + $0x3] ss:$0 sm:$0xff] }
0x152f   :  { %v1574_v2 = vpop.permute.xlu0 %1573 }
0x1530   :  { %v1576_v3 = vmul.f32 %v2881_v61, %v1574_v2 }
0x1532   :  { %1578 = vrot.lane.b32.xlu0 %v1576_v3, %s2898_s17 }
0x159d   :  { %v1679_v7 = vpop.permute.xlu1 %1678 }
0x159e   :  { %v1681_v10 = vadd.f32 %v1679_v7, %v1671_v5 }
0x15a0   :  { %2882 = vtanh.f32 %v1681_v10 }
0x15a4   :  { %v1579_v13 = vpop.permute.xlu0 %1578 }
0x15a5   :  { %v1581_v15 = vadd.f32 %v1579_v13, %v1571_v12  ;;  %v1803_v12 = vld [vmem:[%s3419_s4 + $0x70] sm:$0xff] }
0x15a7   :  { %2884 = vtanh.f32 %v1581_v15 }
0x15aa   :  { %v2883_v16 = vpop.eup %2882 }
0x15ab   :  { %1684 = vrot.lane.b32.xlu1 %v2883_v16, %s2897_s16 }
0x15b1   :  { %v2885_v18 = vpop.eup %2884 }
0x15b2   :  { %1584 = vrot.lane.b32.xlu0 %v2885_v18, %s2897_s16 }
0x161d   :  { %v1685_v14 = vpop.permute.xlu1 %1684 }
0x161e   :  { %v1687_v19 = vmul.f32 %v2879_v59, %v1685_v14  ;;  %v1975_v59 = vld [vmem:[%s3424_s6 + $0x38] sm:$0xff] }
0x161f   :  { %v2781_v60 = vpack.c.bf16 %v1975_v59, %v1974_v58 }
0x1620   :  { %1689 = vrot.lane.b32.xlu0 %v1687_v19, %s2898_s17 }
0x1624   :  { %v1585_v20 = vpop.permute.xlu0 %1584 }
0x1625   :  { %v1587_v21 = vmul.f32 %v2881_v61, %v1585_v20  ;;  %v1802_v61 = vld [vmem:[%s3419_s4 + $0x68] sm:$0xff]  ;;  %v2193_v20 = vld [vmem:[%s3422_s3 + $0x5] ss:$0 sm:$0xff] }
0x1626   :  { %v2784_v6 = vpack.c.bf16 %v1802_v61, %v1801_v17 }
0x1627   :  { %1693 = vrot.lane.b32.xlu1 %v1587_v21, %s2897_s16 }
0x1692   :  { %v1690_v22 = vpop.permute.xlu0 %1689 }
0x1699   :  { %v1694_v23 = vpop.permute.xlu1 %1693 }
0x169a   :  { %v1696_v24 = vsel %vm132_vm1, %v1690_v22, %v1694_v23 }
0x169b   :  { %2567 = vmatmul.mubr.msk.f32.vlgmr.msra.gmra.mrb[16].mxu0 %vm244_vm2, %v1696_v24 }
0x169c   :  { %2614 = vmatprep.mubr.msk.f32.mxu0 %vm2894_vm0, %v2895_v4  ;;  %2785 = vmatpush3.bf16.msra.mxu0 %v2784_v6 }
0x169d   :  { %2786 = vmatprep.subr.bf16.mxu0 %v2893_v0 }
0x176e   :  { %v1766_v25 = vpop.f32.mrb[16].mxu0 }
0x176f   :  { %v1767_v26 = vadd.f32 %v3075_v56, %v1766_v25  ;;  %v2568_v27 = vpop.f32.mrb[17].mxu0  ;;  %v1797_v56 = vld [vmem:[%s3423_s5 + $0x10] sm:$0xff] }
0x1770   :  { %v2762_v43 = vpack.c.bf16 %v1798_v40, %v1797_v56 }
0x1771   :  { %v2185_v28 = vmul.f32 -1.442695, %v1767_v26 }
0x1772   :  { %2763 = vmatpush3.bf16.msra.mxu1 %v2762_v43 }
0x1773   :  { %2886 = vpow2.f32 %v2185_v28  ;;  %2764 = vmatprep.subr.bf16.mxu1 %v2893_v0 }
0x1776   :  { %2766 = vmatpush3.bf16.msra.mxu1 %v2765_v9 }
0x1777   :  { %2767 = vmatprep.subr.bf16.mxu1 %v2893_v0 }
0x177d   :  { %v2887_v29 = vpop.eup %2886 }
0x177e   :  { %v1773_v30 = vadd.f32 1.0, %v2887_v29 }
0x1780   :  { %2888 = vrcp.f32 %v1773_v30 }
0x178a   :  { %v2889_v8 = vpop.eup %2888 }
0x178b   :  { %v1776_v31 = vmul.f32 2.0, %v2889_v8  ;;  %v1778_v35 = vmul.f32 %v2889_v8, %v1581_v15  ;;  %v2191_v15 = vld [vmem:[%s3422_s3 + $0x4] ss:$0 sm:$0xff] }
0x178d   :  { %v2186_v32 = vadd.f32 -1.0, %v1776_v31 }
0x178f   :  { %1780 = vrot.lane.b32.xlu0 %v2186_v32, %s2897_s16 }
0x1801   :  { %v1781_v33 = vpop.permute.xlu0 %1780 }
0x1802   :  { %v1783_v34 = vmul.f32 %v2889_v8, %v1781_v33 }
0x1804   :  { %1785 = vrot.lane.b32.xlu1 %v1783_v34, %s2898_s17 }
0x1876   :  { %v1786_v36 = vpop.permute.xlu1 %1785 }
0x1877   :  { %v1788_v38 = vadd.f32 %v1786_v36, %v1778_v35 }
0x1879   :  { %2890 = vtanh.f32 %v1788_v38 }
0x1883   :  { %v2891_v11 = vpop.eup %2890 }
0x1884   :  { %1791 = vrot.lane.b32.xlu0 %v2891_v11, %s2897_s16 }
0x18f6   :  { %v1792_v37 = vpop.permute.xlu0 %1791 }
0x18f7   :  { %v1794_v39 = vmul.f32 %v2889_v8, %v1792_v37 }
0x18f9   :  { %1810 = vrot.lane.b32.xlu1 %v1794_v39, %s2898_s17 }
0x196b   :  { %v1811_v51 = vpop.permute.xlu1 %1810 }
0x196c   :  { %2578 = vmatmul.mubr.msk.f32.vlgmr.msra.gmra.mrb[14].mxu1 %vm132_vm1, %v1811_v51 }
0x196d   :  { %2770 = vmatpush3.bf16.msk.msra.mxu1 %vm2769_vm5, %v2768_v48  ;;  %2584 = vmatprep.mubr.msk.f32.mxu1 %vm2894_vm0, %v2895_v4 }
0x196e   :  { %2771 = vmatprep.subr.bf16.mxu1 %v2893_v0 }
0x1970   :  { %2585 = vmatmul.mubr.msk.f32.vlgmr.msra.gmra.mrb[16].mxu1 %vm1884_vm6, %v1808_v42 }
0x1971   :  { %2773 = vmatpush3.bf16.msra.mxu1 %v2772_v52  ;;  %2603 = vmatprep.mubr.msk.f32.mxu1 %vm2894_vm0, %v2895_v4  ;;  %v1973_v4 = vld [vmem:[%s3424_s6 + $0x28] sm:$0xff] }
0x1972   :  { %2774 = vmatprep.subr.bf16.mxu1 %v2893_v0  ;;  %v2778_v57 = vpack.c.bf16 %v1973_v4, %v1972_v55 }
0x1975   :  { %2776 = vmatpush3.bf16.msra.mxu1 %v2775_v54 }
0x1976   :  { %2777 = vmatprep.subr.bf16.mxu1 %v2893_v0 }
0x1979   :  { %2779 = vmatpush3.bf16.msra.mxu1 %v2778_v57 }
0x197a   :  { %2780 = vmatprep.subr.bf16.mxu1 %v2893_v0  ;;  %v1804_v0 = vld [vmem:[%s3419_s4 + $0x78] sm:$0xff] }
0x197b   :  { %v2787_v13 = vpack.c.bf16 %v1804_v0, %v1803_v12 }
0x197d   :  { %2782 = vmatpush3.bf16.msra.mxu1 %v2781_v60  ;;  %2788 = vmatpush3.bf16.msra.mxu0 %v2787_v13 }
0x1a3f   :  { %v1880_v62 = vpop.f32.mrb[14].mxu1 }
0x1a40   :  { %v2579_v63 = vpop.f32.mrb[15].mxu1 }
0x1a43   :  { %v1958_v2 = vpop.f32.mrb[16].mxu1 }
0x1a44   :  { %v1959_v3 = vadd.f32 %v1958_v2, %v1880_v62  ;;  %v2586_v5 = vpop.f32.mrb[17].mxu1 }
0x1a46   :  { %v1966_v7 = vadd.f32 %v2190_v1, %v1959_v3 }
0x1a48   :  { %v1967_v10 = vmax.f32 %v1966_v7, 0.0 }
0x1a4a   :  { %2604 = vmatmul.mubr.msk.f32.vlgmr.msra.gmra.mrb[18].mxu1 %vm244_vm2, %v1967_v10 }
0x1b1d   :  { %v2049_v16 = vpop.f32.mrb[18].mxu1 }
0x1b1e   :  { %v2050_v18 = vadd.f32 %v2191_v15, %v2049_v16  ;;  %v2605_v14 = vpop.f32.mrb[19].mxu1 }
0x1b20   :  { %v2053_v19 = vmax.f32 %v2050_v18, 0.0 }
0x1b22   :  { %2615 = vmatmul.mubr.msk.f32.vlgmr.msra.gmra.mrb[18].mxu0 %vm132_vm1, %v2053_v19 }
0x1bf5   :  { %v2127_v21 = vpop.f32.mrb[18].mxu0 }
0x1bf6   :  { %v2128_v22 = vadd.f32 %v2193_v20, %v2127_v21  ;;  %v2616_v23 = vpop.f32.mrb[19].mxu0 }
0x1bf8   :  { %2131 = vst [vmem:[%s3426_s7] sm:$0xff] %v2128_v22 }

</bundles_post_ra>
